<compile_context>
chip_gen: v7x
topology: tpu7x:2x2x1
jax: 0.10.0
libtpu: 0.0.40
codegen_flags: <defaults>
</compile_context>

<pallas_src>
import math
import jax
import jax.numpy as jnp
from jax.experimental import pallas as pl
from jax.experimental.pallas import tpu as pltpu

DIM = 4                 # feature dimension ("dim" in SimpleModel)
HIDDEN = 6              # hidden width
TIME_EMBED_DIM = 6      # time embedding dimension
MAX_PERIOD = 10000.0
LEAKY_SLOPE = 0.01      # torch.nn.LeakyReLU default negative_slope

_HALF = TIME_EMBED_DIM // 2
# Sinusoidal frequencies with forward()'s `t * 1000` pre-folded in (plain Python
# floats -> inlined constants, nothing captured by the kernel).
_FREQS_X1000 = tuple(
    1000.0 * math.exp(-math.log(MAX_PERIOD) * k / _HALF) for k in range(_HALF)
)

_LANES = 128
_SUBLANES = 8
_BATCH_UNIT = _SUBLANES * _LANES        # 1024: one full (sublane, lane) batch tile


def _leaky_relu(h):
    # mul + max (2 VALU ops) instead of cmp + mul + select (3 ops).
    return jnp.maximum(h, LEAKY_SLOPE * h)


def simple_model_kernel(x_ref, w1_ref, b1_ref, w2_ref, b2_ref,
                        w3_ref, b3_ref, w4_ref, b4_ref, out_ref):
    """x_ref:  [DIM+1, TB, 128] f32 VMEM block (batch spread over sublanes+lanes).
       w*_ref: [F_out, F_in] f32 SMEM.  b*_ref: [F_out] f32 SMEM.
       out_ref:[DIM, TB, 128] f32 VMEM block."""
    t = x_ref[DIM]                                        # [TB, 128] time plane
    planes = [x_ref[i] for i in range(DIM)]               # feature planes
    planes += [jnp.cos(t * f) for f in _FREQS_X1000]      # cos first (torch order)
    planes += [jnp.sin(t * f) for f in _FREQS_X1000]      # then sin

    def linear(in_planes, w_ref, b_ref, n_out):
        # out[j] = b[j] + sum_i w[j, i] * plane_i  — scalar-splat FMAs, no broadcasts.
        outs = []
        for j in range(n_out):
            acc = in_planes[0] * w_ref[j, 0] + b_ref[j]
            for i in range(1, len(in_planes)):
                acc = acc + in_planes[i] * w_ref[j, i]
            outs.append(acc)
        return outs

    h = [_leaky_relu(p) for p in linear(planes, w1_ref, b1_ref, HIDDEN)]
    h = [_leaky_relu(p) for p in linear(h, w2_ref, b2_ref, HIDDEN)]
    h = [_leaky_relu(p) for p in linear(h, w3_ref, b3_ref, HIDDEN)]
    o = linear(h, w4_ref, b4_ref, DIM)
    for j in range(DIM):
        out_ref[j] = o[j]                                 # dense [TB,128] stores


def init_params(key):
    """Deterministic init matching the Linear shapes of SimpleModel(dim=DIM)."""
    def linear(k, fan_in, fan_out):
        k1, k2 = jax.random.split(k)
        bound = 1.0 / math.sqrt(fan_in)
        w = jax.random.uniform(k1, (fan_in, fan_out), jnp.float32, -bound, bound)
        b = jax.random.uniform(k2, (fan_out,), jnp.float32, -bound, bound)
        return w, b

    k1, k2, k3, k4 = jax.random.split(key, 4)
    w1, b1 = linear(k1, DIM + TIME_EMBED_DIM, HIDDEN)
    w2, b2 = linear(k2, HIDDEN, HIDDEN)
    w3, b3 = linear(k3, HIDDEN, HIDDEN)
    w4, b4 = linear(k4, HIDDEN, DIM)
    return (w1, b1, w2, b2, w3, b3, w4, b4)


def simple_model_forward(x, params, *, block_batch=32768):
    """x: [N, DIM+1], last column is time t. Returns [N, DIM]."""
    n = x.shape[0]
    w1, b1, w2, b2, w3, b3, w4, b4 = params

    # --- choose the batch tile (multiple of 8*128) -----------------------------
    bb = min(block_batch, pl.cdiv(n, _BATCH_UNIT) * _BATCH_UNIT)
    if n > _BATCH_UNIT:
        # v7x has 2 TensorCores per chip: keep >= 2 grid steps when possible.
        bb = min(bb, pl.cdiv(pl.cdiv(n, 2), _BATCH_UNIT) * _BATCH_UNIT)
    bb = max(_BATCH_UNIT, (bb // _BATCH_UNIT) * _BATCH_UNIT)
    nb = pl.cdiv(n, bb)            # grid steps
    n_pad = nb * bb
    tb = bb // _LANES              # sublane rows per block (multiple of 8)

    # --- lay the batch over (rows, lanes): [F, n_pad//128, 128] ----------------
    # transpose + pad + reshape fuse into one XLA copy; pad value 0 -> cos(0)/sin(0)
    # in the dead columns, no NaNs.
    # TODO(synk): if the producer/consumer can emit/accept the feature-major
    # [F, N] layout directly, these wrapper transposes disappear entirely.
    xT = x.astype(jnp.float32).T                               # [DIM+1, N]
    if n_pad != n:
        xT = jnp.pad(xT, ((0, 0), (0, n_pad - n)))
    x3 = xT.reshape(DIM + 1, n_pad // _LANES, _LANES)

    # weights as [out, in] / biases as [out] -> SMEM scalars inside the kernel
    wb = (w1.T, b1.reshape(-1), w2.T, b2.reshape(-1),
          w3.T, b3.reshape(-1), w4.T, b4.reshape(-1))
    wb = tuple(a.astype(jnp.float32) for a in wb)

    x_spec = pl.BlockSpec((DIM + 1, tb, _LANES), lambda i: (0, i, 0))
    out_spec = pl.BlockSpec((DIM, tb, _LANES), lambda i: (0, i, 0))
    smem_specs = [pl.BlockSpec(memory_space=pltpu.MemorySpace.SMEM) for _ in wb]

    out3 = pl.pallas_call(
        simple_model_kernel,
        out_shape=jax.ShapeDtypeStruct((DIM, n_pad // _LANES, _LANES), jnp.float32),
        grid=(nb,),
        in_specs=[x_spec] + smem_specs,
        out_specs=out_spec,
        compiler_params=pltpu.CompilerParams(
            dimension_semantics=("parallel",),        # batch axis shards across TCs
            vmem_limit_bytes=48 * 1024 * 1024,        # headroom above v5e's 16 MiB default
        ),
        cost_estimate=pl.CostEstimate(
            flops=350 * n_pad,            # ~156 MACs + activations per element
            transcendentals=6 * n_pad,    # 3 cos + 3 sin per element
            bytes_accessed=36 * n_pad,    # 20 B in + 16 B out per element
        ),
    )(x3, *wb)

    return out3.reshape(DIM, n_pad)[:, :n].T                   # back to [N, DIM]


def reference_forward(x, params):
    """Pure-JAX reference mirroring the PyTorch forward."""
    w1, b1, w2, b2, w3, b3, w4, b4 = params
    t = x[:, -1].astype(jnp.float32)
    feats = x[:, :-1].astype(jnp.float32)
    freqs = jnp.asarray(_FREQS_X1000, dtype=jnp.float32)        # == base_freqs * 1000
    args = t[:, None] * freqs[None, :]
    emb = jnp.concatenate([jnp.cos(args), jnp.sin(args)], axis=-1)
    h = jnp.concatenate([feats, emb], axis=1)
    h = _leaky_relu(h @ w1 + b1)
    h = _leaky_relu(h @ w2 + b2)
    h = _leaky_relu(h @ w3 + b3)
    return h @ w4 + b4


if __name__ == "__main__":
    key = jax.random.PRNGKey(0)
    k_x, k_p = jax.random.split(key)
    params = init_params(k_p)

    # Small case (N=8), single grid step.
    N = 8
    feats = jax.random.normal(k_x, (N, DIM), jnp.float32)
    times = jax.random.uniform(jax.random.fold_in(k_x, 1), (N, 1), jnp.float32)
    x = jnp.concatenate([feats, times], axis=1)

    out = jax.block_until_ready(simple_model_forward(x, params))
    ref = reference_forward(x, params)
    assert out.shape == (N, DIM)
    assert jnp.allclose(out, ref, atol=1e-3, rtol=1e-3), "mismatch vs JAX reference (N=8)"

    # Ragged multi-block case (exercises grid > 1 and padding path).
    N2 = 3000
    feats2 = jax.random.normal(jax.random.fold_in(k_x, 2), (N2, DIM), jnp.float32)
    times2 = jax.random.uniform(jax.random.fold_in(k_x, 3), (N2, 1), jnp.float32)
    x2 = jnp.concatenate([feats2, times2], axis=1)

    out2 = jax.block_until_ready(simple_model_forward(x2, params, block_batch=1024))
    ref2 = reference_forward(x2, params)
    assert out2.shape == (N2, DIM)
    assert jnp.allclose(out2, ref2, atol=1e-3, rtol=1e-3), "mismatch vs JAX reference (N=3000)"

    print("KERNEL_OK")
</pallas_src>

<mosaic_0001>
module attributes {stable_mosaic.version = 11 : i64} {
  func.func @simple_model_kernel(%arg0: i32, %arg1: memref<5x8x128xf32, #tpu.memory_space<vmem>>, %arg2: memref<6x10xf32, #tpu.memory_space<smem>>, %arg3: memref<6xf32, #tpu.memory_space<smem>>, %arg4: memref<6x6xf32, #tpu.memory_space<smem>>, %arg5: memref<6xf32, #tpu.memory_space<smem>>, %arg6: memref<6x6xf32, #tpu.memory_space<smem>>, %arg7: memref<6xf32, #tpu.memory_space<smem>>, %arg8: memref<4x6xf32, #tpu.memory_space<smem>>, %arg9: memref<4xf32, #tpu.memory_space<smem>>, %arg10: memref<4x8x128xf32, #tpu.memory_space<vmem>>) attributes {dimension_semantics = [#tpu.dimension_semantics<parallel>], iteration_bounds = array<i64: 1>, scalar_prefetch = 0 : i64, scratch_operands = 0 : i64, tpu.core_type = #tpu.core_type<tc>, window_params = [{transform_indices = @transform_0, window_bounds = array<i64: 5, 8, 128>}, {transform_indices = @transform_1, window_bounds = array<i64: 6, 10>}, {transform_indices = @transform_2, window_bounds = array<i64: 6>}, {transform_indices = @transform_3, window_bounds = array<i64: 6, 6>}, {transform_indices = @transform_4, window_bounds = array<i64: 6>}, {transform_indices = @transform_5, window_bounds = array<i64: 6, 6>}, {transform_indices = @transform_6, window_bounds = array<i64: 6>}, {transform_indices = @transform_7, window_bounds = array<i64: 4, 6>}, {transform_indices = @transform_8, window_bounds = array<i64: 4>}, {transform_indices = @transform_9, window_bounds = array<i64: 4, 8, 128>}]} {
    %c4 = arith.constant 4 : index
    %c0 = arith.constant 0 : index
    %c0_0 = arith.constant 0 : index
    %0 = vector.load %arg1[%c4, %c0, %c0_0] : memref<5x8x128xf32, #tpu.memory_space<vmem>>, vector<1x8x128xf32>
    %1 = vector.shape_cast %0 : vector<1x8x128xf32> to vector<8x128xf32>
    %c0_1 = arith.constant 0 : index
    %c0_2 = arith.constant 0 : index
    %c0_3 = arith.constant 0 : index
    %2 = vector.load %arg1[%c0_1, %c0_2, %c0_3] : memref<5x8x128xf32, #tpu.memory_space<vmem>>, vector<1x8x128xf32>
    %3 = vector.shape_cast %2 : vector<1x8x128xf32> to vector<8x128xf32>
    %c1 = arith.constant 1 : index
    %c0_4 = arith.constant 0 : index
    %c0_5 = arith.constant 0 : index
    %4 = vector.load %arg1[%c1, %c0_4, %c0_5] : memref<5x8x128xf32, #tpu.memory_space<vmem>>, vector<1x8x128xf32>
    %5 = vector.shape_cast %4 : vector<1x8x128xf32> to vector<8x128xf32>
    %c2 = arith.constant 2 : index
    %c0_6 = arith.constant 0 : index
    %c0_7 = arith.constant 0 : index
    %6 = vector.load %arg1[%c2, %c0_6, %c0_7] : memref<5x8x128xf32, #tpu.memory_space<vmem>>, vector<1x8x128xf32>
    %7 = vector.shape_cast %6 : vector<1x8x128xf32> to vector<8x128xf32>
    %c3 = arith.constant 3 : index
    %c0_8 = arith.constant 0 : index
    %c0_9 = arith.constant 0 : index
    %8 = vector.load %arg1[%c3, %c0_8, %c0_9] : memref<5x8x128xf32, #tpu.memory_space<vmem>>, vector<1x8x128xf32>
    %9 = vector.shape_cast %8 : vector<1x8x128xf32> to vector<8x128xf32>
    %cst = arith.constant 1.000000e+03 : f32
    %10 = vector.broadcast %cst : f32 to vector<8x128xf32>
    %11 = arith.mulf %1, %10 : vector<8x128xf32>
    %12 = math.cos %11 : vector<8x128xf32>
    %cst_10 = arith.constant 46.4158897 : f32
    %13 = vector.broadcast %cst_10 : f32 to vector<8x128xf32>
    %14 = arith.mulf %1, %13 : vector<8x128xf32>
    %15 = math.cos %14 : vector<8x128xf32>
    %cst_11 = arith.constant 2.15443468 : f32
    %16 = vector.broadcast %cst_11 : f32 to vector<8x128xf32>
    %17 = arith.mulf %1, %16 : vector<8x128xf32>
    %18 = math.cos %17 : vector<8x128xf32>
    %cst_12 = arith.constant 1.000000e+03 : f32
    %19 = vector.broadcast %cst_12 : f32 to vector<8x128xf32>
    %20 = arith.mulf %1, %19 : vector<8x128xf32>
    %21 = math.sin %20 : vector<8x128xf32>
    %cst_13 = arith.constant 46.4158897 : f32
    %22 = vector.broadcast %cst_13 : f32 to vector<8x128xf32>
    %23 = arith.mulf %1, %22 : vector<8x128xf32>
    %24 = math.sin %23 : vector<8x128xf32>
    %cst_14 = arith.constant 2.15443468 : f32
    %25 = vector.broadcast %cst_14 : f32 to vector<8x128xf32>
    %26 = arith.mulf %1, %25 : vector<8x128xf32>
    %27 = math.sin %26 : vector<8x128xf32>
    %c0_15 = arith.constant 0 : index
    %c0_16 = arith.constant 0 : index
    %28 = memref.load %arg2[%c0_15, %c0_16] : memref<6x10xf32, #tpu.memory_space<smem>>
    %29 = vector.broadcast %28 : f32 to vector<8x128xf32>
    %30 = arith.mulf %3, %29 : vector<8x128xf32>
    %c0_17 = arith.constant 0 : index
    %31 = memref.load %arg3[%c0_17] : memref<6xf32, #tpu.memory_space<smem>>
    %32 = vector.broadcast %31 : f32 to vector<8x128xf32>
    %33 = arith.addf %30, %32 : vector<8x128xf32>
    %c0_18 = arith.constant 0 : index
    %c1_19 = arith.constant 1 : index
    %34 = memref.load %arg2[%c0_18, %c1_19] : memref<6x10xf32, #tpu.memory_space<smem>>
    %35 = vector.broadcast %34 : f32 to vector<8x128xf32>
    %36 = arith.mulf %5, %35 : vector<8x128xf32>
    %37 = arith.addf %33, %36 : vector<8x128xf32>
    %c0_20 = arith.constant 0 : index
    %c2_21 = arith.constant 2 : index
    %38 = memref.load %arg2[%c0_20, %c2_21] : memref<6x10xf32, #tpu.memory_space<smem>>
    %39 = vector.broadcast %38 : f32 to vector<8x128xf32>
    %40 = arith.mulf %7, %39 : vector<8x128xf32>
    %41 = arith.addf %37, %40 : vector<8x128xf32>
    %c0_22 = arith.constant 0 : index
    %c3_23 = arith.constant 3 : index
    %42 = memref.load %arg2[%c0_22, %c3_23] : memref<6x10xf32, #tpu.memory_space<smem>>
    %43 = vector.broadcast %42 : f32 to vector<8x128xf32>
    %44 = arith.mulf %9, %43 : vector<8x128xf32>
    %45 = arith.addf %41, %44 : vector<8x128xf32>
    %c0_24 = arith.constant 0 : index
    %c4_25 = arith.constant 4 : index
    %46 = memref.load %arg2[%c0_24, %c4_25] : memref<6x10xf32, #tpu.memory_space<smem>>
    %47 = vector.broadcast %46 : f32 to vector<8x128xf32>
    %48 = arith.mulf %12, %47 : vector<8x128xf32>
    %49 = arith.addf %45, %48 : vector<8x128xf32>
    %c0_26 = arith.constant 0 : index
    %c5 = arith.constant 5 : index
    %50 = memref.load %arg2[%c0_26, %c5] : memref<6x10xf32, #tpu.memory_space<smem>>
    %51 = vector.broadcast %50 : f32 to vector<8x128xf32>
    %52 = arith.mulf %15, %51 : vector<8x128xf32>
    %53 = arith.addf %49, %52 : vector<8x128xf32>
    %c0_27 = arith.constant 0 : index
    %c6 = arith.constant 6 : index
    %54 = memref.load %arg2[%c0_27, %c6] : memref<6x10xf32, #tpu.memory_space<smem>>
    %55 = vector.broadcast %54 : f32 to vector<8x128xf32>
    %56 = arith.mulf %18, %55 : vector<8x128xf32>
    %57 = arith.addf %53, %56 : vector<8x128xf32>
    %c0_28 = arith.constant 0 : index
    %c7 = arith.constant 7 : index
    %58 = memref.load %arg2[%c0_28, %c7] : memref<6x10xf32, #tpu.memory_space<smem>>
    %59 = vector.broadcast %58 : f32 to vector<8x128xf32>
    %60 = arith.mulf %21, %59 : vector<8x128xf32>
    %61 = arith.addf %57, %60 : vector<8x128xf32>
    %c0_29 = arith.constant 0 : index
    %c8 = arith.constant 8 : index
    %62 = memref.load %arg2[%c0_29, %c8] : memref<6x10xf32, #tpu.memory_space<smem>>
    %63 = vector.broadcast %62 : f32 to vector<8x128xf32>
    %64 = arith.mulf %24, %63 : vector<8x128xf32>
    %65 = arith.addf %61, %64 : vector<8x128xf32>
    %c0_30 = arith.constant 0 : index
    %c9 = arith.constant 9 : index
    %66 = memref.load %arg2[%c0_30, %c9] : memref<6x10xf32, #tpu.memory_space<smem>>
    %67 = vector.broadcast %66 : f32 to vector<8x128xf32>
    %68 = arith.mulf %27, %67 : vector<8x128xf32>
    %69 = arith.addf %65, %68 : vector<8x128xf32>
    %c1_31 = arith.constant 1 : index
    %c0_32 = arith.constant 0 : index
    %70 = memref.load %arg2[%c1_31, %c0_32] : memref<6x10xf32, #tpu.memory_space<smem>>
    %71 = vector.broadcast %70 : f32 to vector<8x128xf32>
    %72 = arith.mulf %3, %71 : vector<8x128xf32>
    %c1_33 = arith.constant 1 : index
    %73 = memref.load %arg3[%c1_33] : memref<6xf32, #tpu.memory_space<smem>>
    %74 = vector.broadcast %73 : f32 to vector<8x128xf32>
    %75 = arith.addf %72, %74 : vector<8x128xf32>
    %c1_34 = arith.constant 1 : index
    %c1_35 = arith.constant 1 : index
    %76 = memref.load %arg2[%c1_34, %c1_35] : memref<6x10xf32, #tpu.memory_space<smem>>
    %77 = vector.broadcast %76 : f32 to vector<8x128xf32>
    %78 = arith.mulf %5, %77 : vector<8x128xf32>
    %79 = arith.addf %75, %78 : vector<8x128xf32>
    %c1_36 = arith.constant 1 : index
    %c2_37 = arith.constant 2 : index
    %80 = memref.load %arg2[%c1_36, %c2_37] : memref<6x10xf32, #tpu.memory_space<smem>>
    %81 = vector.broadcast %80 : f32 to vector<8x128xf32>
    %82 = arith.mulf %7, %81 : vector<8x128xf32>
    %83 = arith.addf %79, %82 : vector<8x128xf32>
    %c1_38 = arith.constant 1 : index
    %c3_39 = arith.constant 3 : index
    %84 = memref.load %arg2[%c1_38, %c3_39] : memref<6x10xf32, #tpu.memory_space<smem>>
    %85 = vector.broadcast %84 : f32 to vector<8x128xf32>
    %86 = arith.mulf %9, %85 : vector<8x128xf32>
    %87 = arith.addf %83, %86 : vector<8x128xf32>
    %c1_40 = arith.constant 1 : index
    %c4_41 = arith.constant 4 : index
    %88 = memref.load %arg2[%c1_40, %c4_41] : memref<6x10xf32, #tpu.memory_space<smem>>
    %89 = vector.broadcast %88 : f32 to vector<8x128xf32>
    %90 = arith.mulf %12, %89 : vector<8x128xf32>
    %91 = arith.addf %87, %90 : vector<8x128xf32>
    %c1_42 = arith.constant 1 : index
    %c5_43 = arith.constant 5 : index
    %92 = memref.load %arg2[%c1_42, %c5_43] : memref<6x10xf32, #tpu.memory_space<smem>>
    %93 = vector.broadcast %92 : f32 to vector<8x128xf32>
    %94 = arith.mulf %15, %93 : vector<8x128xf32>
    %95 = arith.addf %91, %94 : vector<8x128xf32>
    %c1_44 = arith.constant 1 : index
    %c6_45 = arith.constant 6 : index
    %96 = memref.load %arg2[%c1_44, %c6_45] : memref<6x10xf32, #tpu.memory_space<smem>>
    %97 = vector.broadcast %96 : f32 to vector<8x128xf32>
    %98 = arith.mulf %18, %97 : vector<8x128xf32>
    %99 = arith.addf %95, %98 : vector<8x128xf32>
    %c1_46 = arith.constant 1 : index
    %c7_47 = arith.constant 7 : index
    %100 = memref.load %arg2[%c1_46, %c7_47] : memref<6x10xf32, #tpu.memory_space<smem>>
    %101 = vector.broadcast %100 : f32 to vector<8x128xf32>
    %102 = arith.mulf %21, %101 : vector<8x128xf32>
    %103 = arith.addf %99, %102 : vector<8x128xf32>
    %c1_48 = arith.constant 1 : index
    %c8_49 = arith.constant 8 : index
    %104 = memref.load %arg2[%c1_48, %c8_49] : memref<6x10xf32, #tpu.memory_space<smem>>
    %105 = vector.broadcast %104 : f32 to vector<8x128xf32>
    %106 = arith.mulf %24, %105 : vector<8x128xf32>
    %107 = arith.addf %103, %106 : vector<8x128xf32>
    %c1_50 = arith.constant 1 : index
    %c9_51 = arith.constant 9 : index
    %108 = memref.load %arg2[%c1_50, %c9_51] : memref<6x10xf32, #tpu.memory_space<smem>>
    %109 = vector.broadcast %108 : f32 to vector<8x128xf32>
    %110 = arith.mulf %27, %109 : vector<8x128xf32>
    %111 = arith.addf %107, %110 : vector<8x128xf32>
    %c2_52 = arith.constant 2 : index
    %c0_53 = arith.constant 0 : index
    %112 = memref.load %arg2[%c2_52, %c0_53] : memref<6x10xf32, #tpu.memory_space<smem>>
    %113 = vector.broadcast %112 : f32 to vector<8x128xf32>
    %114 = arith.mulf %3, %113 : vector<8x128xf32>
    %c2_54 = arith.constant 2 : index
    %115 = memref.load %arg3[%c2_54] : memref<6xf32, #tpu.memory_space<smem>>
    %116 = vector.broadcast %115 : f32 to vector<8x128xf32>
    %117 = arith.addf %114, %116 : vector<8x128xf32>
    %c2_55 = arith.constant 2 : index
    %c1_56 = arith.constant 1 : index
    %118 = memref.load %arg2[%c2_55, %c1_56] : memref<6x10xf32, #tpu.memory_space<smem>>
    %119 = vector.broadcast %118 : f32 to vector<8x128xf32>
    %120 = arith.mulf %5, %119 : vector<8x128xf32>
    %121 = arith.addf %117, %120 : vector<8x128xf32>
    %c2_57 = arith.constant 2 : index
    %c2_58 = arith.constant 2 : index
    %122 = memref.load %arg2[%c2_57, %c2_58] : memref<6x10xf32, #tpu.memory_space<smem>>
    %123 = vector.broadcast %122 : f32 to vector<8x128xf32>
    %124 = arith.mulf %7, %123 : vector<8x128xf32>
    %125 = arith.addf %121, %124 : vector<8x128xf32>
    %c2_59 = arith.constant 2 : index
    %c3_60 = arith.constant 3 : index
    %126 = memref.load %arg2[%c2_59, %c3_60] : memref<6x10xf32, #tpu.memory_space<smem>>
    %127 = vector.broadcast %126 : f32 to vector<8x128xf32>
    %128 = arith.mulf %9, %127 : vector<8x128xf32>
    %129 = arith.addf %125, %128 : vector<8x128xf32>
    %c2_61 = arith.constant 2 : index
    %c4_62 = arith.constant 4 : index
    %130 = memref.load %arg2[%c2_61, %c4_62] : memref<6x10xf32, #tpu.memory_space<smem>>
    %131 = vector.broadcast %130 : f32 to vector<8x128xf32>
    %132 = arith.mulf %12, %131 : vector<8x128xf32>
    %133 = arith.addf %129, %132 : vector<8x128xf32>
    %c2_63 = arith.constant 2 : index
    %c5_64 = arith.constant 5 : index
    %134 = memref.load %arg2[%c2_63, %c5_64] : memref<6x10xf32, #tpu.memory_space<smem>>
    %135 = vector.broadcast %134 : f32 to vector<8x128xf32>
    %136 = arith.mulf %15, %135 : vector<8x128xf32>
    %137 = arith.addf %133, %136 : vector<8x128xf32>
    %c2_65 = arith.constant 2 : index
    %c6_66 = arith.constant 6 : index
    %138 = memref.load %arg2[%c2_65, %c6_66] : memref<6x10xf32, #tpu.memory_space<smem>>
    %139 = vector.broadcast %138 : f32 to vector<8x128xf32>
    %140 = arith.mulf %18, %139 : vector<8x128xf32>
    %141 = arith.addf %137, %140 : vector<8x128xf32>
    %c2_67 = arith.constant 2 : index
    %c7_68 = arith.constant 7 : index
    %142 = memref.load %arg2[%c2_67, %c7_68] : memref<6x10xf32, #tpu.memory_space<smem>>
    %143 = vector.broadcast %142 : f32 to vector<8x128xf32>
    %144 = arith.mulf %21, %143 : vector<8x128xf32>
    %145 = arith.addf %141, %144 : vector<8x128xf32>
    %c2_69 = arith.constant 2 : index
    %c8_70 = arith.constant 8 : index
    %146 = memref.load %arg2[%c2_69, %c8_70] : memref<6x10xf32, #tpu.memory_space<smem>>
    %147 = vector.broadcast %146 : f32 to vector<8x128xf32>
    %148 = arith.mulf %24, %147 : vector<8x128xf32>
    %149 = arith.addf %145, %148 : vector<8x128xf32>
    %c2_71 = arith.constant 2 : index
    %c9_72 = arith.constant 9 : index
    %150 = memref.load %arg2[%c2_71, %c9_72] : memref<6x10xf32, #tpu.memory_space<smem>>
    %151 = vector.broadcast %150 : f32 to vector<8x128xf32>
    %152 = arith.mulf %27, %151 : vector<8x128xf32>
    %153 = arith.addf %149, %152 : vector<8x128xf32>
    %c3_73 = arith.constant 3 : index
    %c0_74 = arith.constant 0 : index
    %154 = memref.load %arg2[%c3_73, %c0_74] : memref<6x10xf32, #tpu.memory_space<smem>>
    %155 = vector.broadcast %154 : f32 to vector<8x128xf32>
    %156 = arith.mulf %3, %155 : vector<8x128xf32>
    %c3_75 = arith.constant 3 : index
    %157 = memref.load %arg3[%c3_75] : memref<6xf32, #tpu.memory_space<smem>>
    %158 = vector.broadcast %157 : f32 to vector<8x128xf32>
    %159 = arith.addf %156, %158 : vector<8x128xf32>
    %c3_76 = arith.constant 3 : index
    %c1_77 = arith.constant 1 : index
    %160 = memref.load %arg2[%c3_76, %c1_77] : memref<6x10xf32, #tpu.memory_space<smem>>
    %161 = vector.broadcast %160 : f32 to vector<8x128xf32>
    %162 = arith.mulf %5, %161 : vector<8x128xf32>
    %163 = arith.addf %159, %162 : vector<8x128xf32>
    %c3_78 = arith.constant 3 : index
    %c2_79 = arith.constant 2 : index
    %164 = memref.load %arg2[%c3_78, %c2_79] : memref<6x10xf32, #tpu.memory_space<smem>>
    %165 = vector.broadcast %164 : f32 to vector<8x128xf32>
    %166 = arith.mulf %7, %165 : vector<8x128xf32>
    %167 = arith.addf %163, %166 : vector<8x128xf32>
    %c3_80 = arith.constant 3 : index
    %c3_81 = arith.constant 3 : index
    %168 = memref.load %arg2[%c3_80, %c3_81] : memref<6x10xf32, #tpu.memory_space<smem>>
    %169 = vector.broadcast %168 : f32 to vector<8x128xf32>
    %170 = arith.mulf %9, %169 : vector<8x128xf32>
    %171 = arith.addf %167, %170 : vector<8x128xf32>
    %c3_82 = arith.constant 3 : index
    %c4_83 = arith.constant 4 : index
    %172 = memref.load %arg2[%c3_82, %c4_83] : memref<6x10xf32, #tpu.memory_space<smem>>
    %173 = vector.broadcast %172 : f32 to vector<8x128xf32>
    %174 = arith.mulf %12, %173 : vector<8x128xf32>
    %175 = arith.addf %171, %174 : vector<8x128xf32>
    %c3_84 = arith.constant 3 : index
    %c5_85 = arith.constant 5 : index
    %176 = memref.load %arg2[%c3_84, %c5_85] : memref<6x10xf32, #tpu.memory_space<smem>>
    %177 = vector.broadcast %176 : f32 to vector<8x128xf32>
    %178 = arith.mulf %15, %177 : vector<8x128xf32>
    %179 = arith.addf %175, %178 : vector<8x128xf32>
    %c3_86 = arith.constant 3 : index
    %c6_87 = arith.constant 6 : index
    %180 = memref.load %arg2[%c3_86, %c6_87] : memref<6x10xf32, #tpu.memory_space<smem>>
    %181 = vector.broadcast %180 : f32 to vector<8x128xf32>
    %182 = arith.mulf %18, %181 : vector<8x128xf32>
    %183 = arith.addf %179, %182 : vector<8x128xf32>
    %c3_88 = arith.constant 3 : index
    %c7_89 = arith.constant 7 : index
    %184 = memref.load %arg2[%c3_88, %c7_89] : memref<6x10xf32, #tpu.memory_space<smem>>
    %185 = vector.broadcast %184 : f32 to vector<8x128xf32>
    %186 = arith.mulf %21, %185 : vector<8x128xf32>
    %187 = arith.addf %183, %186 : vector<8x128xf32>
    %c3_90 = arith.constant 3 : index
    %c8_91 = arith.constant 8 : index
    %188 = memref.load %arg2[%c3_90, %c8_91] : memref<6x10xf32, #tpu.memory_space<smem>>
    %189 = vector.broadcast %188 : f32 to vector<8x128xf32>
    %190 = arith.mulf %24, %189 : vector<8x128xf32>
    %191 = arith.addf %187, %190 : vector<8x128xf32>
    %c3_92 = arith.constant 3 : index
    %c9_93 = arith.constant 9 : index
    %192 = memref.load %arg2[%c3_92, %c9_93] : memref<6x10xf32, #tpu.memory_space<smem>>
    %193 = vector.broadcast %192 : f32 to vector<8x128xf32>
    %194 = arith.mulf %27, %193 : vector<8x128xf32>
    %195 = arith.addf %191, %194 : vector<8x128xf32>
    %c4_94 = arith.constant 4 : index
    %c0_95 = arith.constant 0 : index
    %196 = memref.load %arg2[%c4_94, %c0_95] : memref<6x10xf32, #tpu.memory_space<smem>>
    %197 = vector.broadcast %196 : f32 to vector<8x128xf32>
    %198 = arith.mulf %3, %197 : vector<8x128xf32>
    %c4_96 = arith.constant 4 : index
    %199 = memref.load %arg3[%c4_96] : memref<6xf32, #tpu.memory_space<smem>>
    %200 = vector.broadcast %199 : f32 to vector<8x128xf32>
    %201 = arith.addf %198, %200 : vector<8x128xf32>
    %c4_97 = arith.constant 4 : index
    %c1_98 = arith.constant 1 : index
    %202 = memref.load %arg2[%c4_97, %c1_98] : memref<6x10xf32, #tpu.memory_space<smem>>
    %203 = vector.broadcast %202 : f32 to vector<8x128xf32>
    %204 = arith.mulf %5, %203 : vector<8x128xf32>
    %205 = arith.addf %201, %204 : vector<8x128xf32>
    %c4_99 = arith.constant 4 : index
    %c2_100 = arith.constant 2 : index
    %206 = memref.load %arg2[%c4_99, %c2_100] : memref<6x10xf32, #tpu.memory_space<smem>>
    %207 = vector.broadcast %206 : f32 to vector<8x128xf32>
    %208 = arith.mulf %7, %207 : vector<8x128xf32>
    %209 = arith.addf %205, %208 : vector<8x128xf32>
    %c4_101 = arith.constant 4 : index
    %c3_102 = arith.constant 3 : index
    %210 = memref.load %arg2[%c4_101, %c3_102] : memref<6x10xf32, #tpu.memory_space<smem>>
    %211 = vector.broadcast %210 : f32 to vector<8x128xf32>
    %212 = arith.mulf %9, %211 : vector<8x128xf32>
    %213 = arith.addf %209, %212 : vector<8x128xf32>
    %c4_103 = arith.constant 4 : index
    %c4_104 = arith.constant 4 : index
    %214 = memref.load %arg2[%c4_103, %c4_104] : memref<6x10xf32, #tpu.memory_space<smem>>
    %215 = vector.broadcast %214 : f32 to vector<8x128xf32>
    %216 = arith.mulf %12, %215 : vector<8x128xf32>
    %217 = arith.addf %213, %216 : vector<8x128xf32>
    %c4_105 = arith.constant 4 : index
    %c5_106 = arith.constant 5 : index
    %218 = memref.load %arg2[%c4_105, %c5_106] : memref<6x10xf32, #tpu.memory_space<smem>>
    %219 = vector.broadcast %218 : f32 to vector<8x128xf32>
    %220 = arith.mulf %15, %219 : vector<8x128xf32>
    %221 = arith.addf %217, %220 : vector<8x128xf32>
    %c4_107 = arith.constant 4 : index
    %c6_108 = arith.constant 6 : index
    %222 = memref.load %arg2[%c4_107, %c6_108] : memref<6x10xf32, #tpu.memory_space<smem>>
    %223 = vector.broadcast %222 : f32 to vector<8x128xf32>
    %224 = arith.mulf %18, %223 : vector<8x128xf32>
    %225 = arith.addf %221, %224 : vector<8x128xf32>
    %c4_109 = arith.constant 4 : index
    %c7_110 = arith.constant 7 : index
    %226 = memref.load %arg2[%c4_109, %c7_110] : memref<6x10xf32, #tpu.memory_space<smem>>
    %227 = vector.broadcast %226 : f32 to vector<8x128xf32>
    %228 = arith.mulf %21, %227 : vector<8x128xf32>
    %229 = arith.addf %225, %228 : vector<8x128xf32>
    %c4_111 = arith.constant 4 : index
    %c8_112 = arith.constant 8 : index
    %230 = memref.load %arg2[%c4_111, %c8_112] : memref<6x10xf32, #tpu.memory_space<smem>>
    %231 = vector.broadcast %230 : f32 to vector<8x128xf32>
    %232 = arith.mulf %24, %231 : vector<8x128xf32>
    %233 = arith.addf %229, %232 : vector<8x128xf32>
    %c4_113 = arith.constant 4 : index
    %c9_114 = arith.constant 9 : index
    %234 = memref.load %arg2[%c4_113, %c9_114] : memref<6x10xf32, #tpu.memory_space<smem>>
    %235 = vector.broadcast %234 : f32 to vector<8x128xf32>
    %236 = arith.mulf %27, %235 : vector<8x128xf32>
    %237 = arith.addf %233, %236 : vector<8x128xf32>
    %c5_115 = arith.constant 5 : index
    %c0_116 = arith.constant 0 : index
    %238 = memref.load %arg2[%c5_115, %c0_116] : memref<6x10xf32, #tpu.memory_space<smem>>
    %239 = vector.broadcast %238 : f32 to vector<8x128xf32>
    %240 = arith.mulf %3, %239 : vector<8x128xf32>
    %c5_117 = arith.constant 5 : index
    %241 = memref.load %arg3[%c5_117] : memref<6xf32, #tpu.memory_space<smem>>
    %242 = vector.broadcast %241 : f32 to vector<8x128xf32>
    %243 = arith.addf %240, %242 : vector<8x128xf32>
    %c5_118 = arith.constant 5 : index
    %c1_119 = arith.constant 1 : index
    %244 = memref.load %arg2[%c5_118, %c1_119] : memref<6x10xf32, #tpu.memory_space<smem>>
    %245 = vector.broadcast %244 : f32 to vector<8x128xf32>
    %246 = arith.mulf %5, %245 : vector<8x128xf32>
    %247 = arith.addf %243, %246 : vector<8x128xf32>
    %c5_120 = arith.constant 5 : index
    %c2_121 = arith.constant 2 : index
    %248 = memref.load %arg2[%c5_120, %c2_121] : memref<6x10xf32, #tpu.memory_space<smem>>
    %249 = vector.broadcast %248 : f32 to vector<8x128xf32>
    %250 = arith.mulf %7, %249 : vector<8x128xf32>
    %251 = arith.addf %247, %250 : vector<8x128xf32>
    %c5_122 = arith.constant 5 : index
    %c3_123 = arith.constant 3 : index
    %252 = memref.load %arg2[%c5_122, %c3_123] : memref<6x10xf32, #tpu.memory_space<smem>>
    %253 = vector.broadcast %252 : f32 to vector<8x128xf32>
    %254 = arith.mulf %9, %253 : vector<8x128xf32>
    %255 = arith.addf %251, %254 : vector<8x128xf32>
    %c5_124 = arith.constant 5 : index
    %c4_125 = arith.constant 4 : index
    %256 = memref.load %arg2[%c5_124, %c4_125] : memref<6x10xf32, #tpu.memory_space<smem>>
    %257 = vector.broadcast %256 : f32 to vector<8x128xf32>
    %258 = arith.mulf %12, %257 : vector<8x128xf32>
    %259 = arith.addf %255, %258 : vector<8x128xf32>
    %c5_126 = arith.constant 5 : index
    %c5_127 = arith.constant 5 : index
    %260 = memref.load %arg2[%c5_126, %c5_127] : memref<6x10xf32, #tpu.memory_space<smem>>
    %261 = vector.broadcast %260 : f32 to vector<8x128xf32>
    %262 = arith.mulf %15, %261 : vector<8x128xf32>
    %263 = arith.addf %259, %262 : vector<8x128xf32>
    %c5_128 = arith.constant 5 : index
    %c6_129 = arith.constant 6 : index
    %264 = memref.load %arg2[%c5_128, %c6_129] : memref<6x10xf32, #tpu.memory_space<smem>>
    %265 = vector.broadcast %264 : f32 to vector<8x128xf32>
    %266 = arith.mulf %18, %265 : vector<8x128xf32>
    %267 = arith.addf %263, %266 : vector<8x128xf32>
    %c5_130 = arith.constant 5 : index
    %c7_131 = arith.constant 7 : index
    %268 = memref.load %arg2[%c5_130, %c7_131] : memref<6x10xf32, #tpu.memory_space<smem>>
    %269 = vector.broadcast %268 : f32 to vector<8x128xf32>
    %270 = arith.mulf %21, %269 : vector<8x128xf32>
    %271 = arith.addf %267, %270 : vector<8x128xf32>
    %c5_132 = arith.constant 5 : index
    %c8_133 = arith.constant 8 : index
    %272 = memref.load %arg2[%c5_132, %c8_133] : memref<6x10xf32, #tpu.memory_space<smem>>
    %273 = vector.broadcast %272 : f32 to vector<8x128xf32>
    %274 = arith.mulf %24, %273 : vector<8x128xf32>
    %275 = arith.addf %271, %274 : vector<8x128xf32>
    %c5_134 = arith.constant 5 : index
    %c9_135 = arith.constant 9 : index
    %276 = memref.load %arg2[%c5_134, %c9_135] : memref<6x10xf32, #tpu.memory_space<smem>>
    %277 = vector.broadcast %276 : f32 to vector<8x128xf32>
    %278 = arith.mulf %27, %277 : vector<8x128xf32>
    %279 = arith.addf %275, %278 : vector<8x128xf32>
    %cst_136 = arith.constant 0.00999999977 : f32
    %280 = vector.broadcast %cst_136 : f32 to vector<8x128xf32>
    %281 = arith.mulf %280, %69 : vector<8x128xf32>
    %282 = arith.maximumf %69, %281 : vector<8x128xf32>
    %cst_137 = arith.constant 0.00999999977 : f32
    %283 = vector.broadcast %cst_137 : f32 to vector<8x128xf32>
    %284 = arith.mulf %283, %111 : vector<8x128xf32>
    %285 = arith.maximumf %111, %284 : vector<8x128xf32>
    %cst_138 = arith.constant 0.00999999977 : f32
    %286 = vector.broadcast %cst_138 : f32 to vector<8x128xf32>
    %287 = arith.mulf %286, %153 : vector<8x128xf32>
    %288 = arith.maximumf %153, %287 : vector<8x128xf32>
    %cst_139 = arith.constant 0.00999999977 : f32
    %289 = vector.broadcast %cst_139 : f32 to vector<8x128xf32>
    %290 = arith.mulf %289, %195 : vector<8x128xf32>
    %291 = arith.maximumf %195, %290 : vector<8x128xf32>
    %cst_140 = arith.constant 0.00999999977 : f32
    %292 = vector.broadcast %cst_140 : f32 to vector<8x128xf32>
    %293 = arith.mulf %292, %237 : vector<8x128xf32>
    %294 = arith.maximumf %237, %293 : vector<8x128xf32>
    %cst_141 = arith.constant 0.00999999977 : f32
    %295 = vector.broadcast %cst_141 : f32 to vector<8x128xf32>
    %296 = arith.mulf %295, %279 : vector<8x128xf32>
    %297 = arith.maximumf %279, %296 : vector<8x128xf32>
    %c0_142 = arith.constant 0 : index
    %c0_143 = arith.constant 0 : index
    %298 = memref.load %arg4[%c0_142, %c0_143] : memref<6x6xf32, #tpu.memory_space<smem>>
    %299 = vector.broadcast %298 : f32 to vector<8x128xf32>
    %300 = arith.mulf %282, %299 : vector<8x128xf32>
    %c0_144 = arith.constant 0 : index
    %301 = memref.load %arg5[%c0_144] : memref<6xf32, #tpu.memory_space<smem>>
    %302 = vector.broadcast %301 : f32 to vector<8x128xf32>
    %303 = arith.addf %300, %302 : vector<8x128xf32>
    %c0_145 = arith.constant 0 : index
    %c1_146 = arith.constant 1 : index
    %304 = memref.load %arg4[%c0_145, %c1_146] : memref<6x6xf32, #tpu.memory_space<smem>>
    %305 = vector.broadcast %304 : f32 to vector<8x128xf32>
    %306 = arith.mulf %285, %305 : vector<8x128xf32>
    %307 = arith.addf %303, %306 : vector<8x128xf32>
    %c0_147 = arith.constant 0 : index
    %c2_148 = arith.constant 2 : index
    %308 = memref.load %arg4[%c0_147, %c2_148] : memref<6x6xf32, #tpu.memory_space<smem>>
    %309 = vector.broadcast %308 : f32 to vector<8x128xf32>
    %310 = arith.mulf %288, %309 : vector<8x128xf32>
    %311 = arith.addf %307, %310 : vector<8x128xf32>
    %c0_149 = arith.constant 0 : index
    %c3_150 = arith.constant 3 : index
    %312 = memref.load %arg4[%c0_149, %c3_150] : memref<6x6xf32, #tpu.memory_space<smem>>
    %313 = vector.broadcast %312 : f32 to vector<8x128xf32>
    %314 = arith.mulf %291, %313 : vector<8x128xf32>
    %315 = arith.addf %311, %314 : vector<8x128xf32>
    %c0_151 = arith.constant 0 : index
    %c4_152 = arith.constant 4 : index
    %316 = memref.load %arg4[%c0_151, %c4_152] : memref<6x6xf32, #tpu.memory_space<smem>>
    %317 = vector.broadcast %316 : f32 to vector<8x128xf32>
    %318 = arith.mulf %294, %317 : vector<8x128xf32>
    %319 = arith.addf %315, %318 : vector<8x128xf32>
    %c0_153 = arith.constant 0 : index
    %c5_154 = arith.constant 5 : index
    %320 = memref.load %arg4[%c0_153, %c5_154] : memref<6x6xf32, #tpu.memory_space<smem>>
    %321 = vector.broadcast %320 : f32 to vector<8x128xf32>
    %322 = arith.mulf %297, %321 : vector<8x128xf32>
    %323 = arith.addf %319, %322 : vector<8x128xf32>
    %c1_155 = arith.constant 1 : index
    %c0_156 = arith.constant 0 : index
    %324 = memref.load %arg4[%c1_155, %c0_156] : memref<6x6xf32, #tpu.memory_space<smem>>
    %325 = vector.broadcast %324 : f32 to vector<8x128xf32>
    %326 = arith.mulf %282, %325 : vector<8x128xf32>
    %c1_157 = arith.constant 1 : index
    %327 = memref.load %arg5[%c1_157] : memref<6xf32, #tpu.memory_space<smem>>
    %328 = vector.broadcast %327 : f32 to vector<8x128xf32>
    %329 = arith.addf %326, %328 : vector<8x128xf32>
    %c1_158 = arith.constant 1 : index
    %c1_159 = arith.constant 1 : index
    %330 = memref.load %arg4[%c1_158, %c1_159] : memref<6x6xf32, #tpu.memory_space<smem>>
    %331 = vector.broadcast %330 : f32 to vector<8x128xf32>
    %332 = arith.mulf %285, %331 : vector<8x128xf32>
    %333 = arith.addf %329, %332 : vector<8x128xf32>
    %c1_160 = arith.constant 1 : index
    %c2_161 = arith.constant 2 : index
    %334 = memref.load %arg4[%c1_160, %c2_161] : memref<6x6xf32, #tpu.memory_space<smem>>
    %335 = vector.broadcast %334 : f32 to vector<8x128xf32>
    %336 = arith.mulf %288, %335 : vector<8x128xf32>
    %337 = arith.addf %333, %336 : vector<8x128xf32>
    %c1_162 = arith.constant 1 : index
    %c3_163 = arith.constant 3 : index
    %338 = memref.load %arg4[%c1_162, %c3_163] : memref<6x6xf32, #tpu.memory_space<smem>>
    %339 = vector.broadcast %338 : f32 to vector<8x128xf32>
    %340 = arith.mulf %291, %339 : vector<8x128xf32>
    %341 = arith.addf %337, %340 : vector<8x128xf32>
    %c1_164 = arith.constant 1 : index
    %c4_165 = arith.constant 4 : index
    %342 = memref.load %arg4[%c1_164, %c4_165] : memref<6x6xf32, #tpu.memory_space<smem>>
    %343 = vector.broadcast %342 : f32 to vector<8x128xf32>
    %344 = arith.mulf %294, %343 : vector<8x128xf32>
    %345 = arith.addf %341, %344 : vector<8x128xf32>
    %c1_166 = arith.constant 1 : index
    %c5_167 = arith.constant 5 : index
    %346 = memref.load %arg4[%c1_166, %c5_167] : memref<6x6xf32, #tpu.memory_space<smem>>
    %347 = vector.broadcast %346 : f32 to vector<8x128xf32>
    %348 = arith.mulf %297, %347 : vector<8x128xf32>
    %349 = arith.addf %345, %348 : vector<8x128xf32>
    %c2_168 = arith.constant 2 : index
    %c0_169 = arith.constant 0 : index
    %350 = memref.load %arg4[%c2_168, %c0_169] : memref<6x6xf32, #tpu.memory_space<smem>>
    %351 = vector.broadcast %350 : f32 to vector<8x128xf32>
    %352 = arith.mulf %282, %351 : vector<8x128xf32>
    %c2_170 = arith.constant 2 : index
    %353 = memref.load %arg5[%c2_170] : memref<6xf32, #tpu.memory_space<smem>>
    %354 = vector.broadcast %353 : f32 to vector<8x128xf32>
    %355 = arith.addf %352, %354 : vector<8x128xf32>
    %c2_171 = arith.constant 2 : index
    %c1_172 = arith.constant 1 : index
    %356 = memref.load %arg4[%c2_171, %c1_172] : memref<6x6xf32, #tpu.memory_space<smem>>
    %357 = vector.broadcast %356 : f32 to vector<8x128xf32>
    %358 = arith.mulf %285, %357 : vector<8x128xf32>
    %359 = arith.addf %355, %358 : vector<8x128xf32>
    %c2_173 = arith.constant 2 : index
    %c2_174 = arith.constant 2 : index
    %360 = memref.load %arg4[%c2_173, %c2_174] : memref<6x6xf32, #tpu.memory_space<smem>>
    %361 = vector.broadcast %360 : f32 to vector<8x128xf32>
    %362 = arith.mulf %288, %361 : vector<8x128xf32>
    %363 = arith.addf %359, %362 : vector<8x128xf32>
    %c2_175 = arith.constant 2 : index
    %c3_176 = arith.constant 3 : index
    %364 = memref.load %arg4[%c2_175, %c3_176] : memref<6x6xf32, #tpu.memory_space<smem>>
    %365 = vector.broadcast %364 : f32 to vector<8x128xf32>
    %366 = arith.mulf %291, %365 : vector<8x128xf32>
    %367 = arith.addf %363, %366 : vector<8x128xf32>
    %c2_177 = arith.constant 2 : index
    %c4_178 = arith.constant 4 : index
    %368 = memref.load %arg4[%c2_177, %c4_178] : memref<6x6xf32, #tpu.memory_space<smem>>
    %369 = vector.broadcast %368 : f32 to vector<8x128xf32>
    %370 = arith.mulf %294, %369 : vector<8x128xf32>
    %371 = arith.addf %367, %370 : vector<8x128xf32>
    %c2_179 = arith.constant 2 : index
    %c5_180 = arith.constant 5 : index
    %372 = memref.load %arg4[%c2_179, %c5_180] : memref<6x6xf32, #tpu.memory_space<smem>>
    %373 = vector.broadcast %372 : f32 to vector<8x128xf32>
    %374 = arith.mulf %297, %373 : vector<8x128xf32>
    %375 = arith.addf %371, %374 : vector<8x128xf32>
    %c3_181 = arith.constant 3 : index
    %c0_182 = arith.constant 0 : index
    %376 = memref.load %arg4[%c3_181, %c0_182] : memref<6x6xf32, #tpu.memory_space<smem>>
    %377 = vector.broadcast %376 : f32 to vector<8x128xf32>
    %378 = arith.mulf %282, %377 : vector<8x128xf32>
    %c3_183 = arith.constant 3 : index
    %379 = memref.load %arg5[%c3_183] : memref<6xf32, #tpu.memory_space<smem>>
    %380 = vector.broadcast %379 : f32 to vector<8x128xf32>
    %381 = arith.addf %378, %380 : vector<8x128xf32>
    %c3_184 = arith.constant 3 : index
    %c1_185 = arith.constant 1 : index
    %382 = memref.load %arg4[%c3_184, %c1_185] : memref<6x6xf32, #tpu.memory_space<smem>>
    %383 = vector.broadcast %382 : f32 to vector<8x128xf32>
    %384 = arith.mulf %285, %383 : vector<8x128xf32>
    %385 = arith.addf %381, %384 : vector<8x128xf32>
    %c3_186 = arith.constant 3 : index
    %c2_187 = arith.constant 2 : index
    %386 = memref.load %arg4[%c3_186, %c2_187] : memref<6x6xf32, #tpu.memory_space<smem>>
    %387 = vector.broadcast %386 : f32 to vector<8x128xf32>
    %388 = arith.mulf %288, %387 : vector<8x128xf32>
    %389 = arith.addf %385, %388 : vector<8x128xf32>
    %c3_188 = arith.constant 3 : index
    %c3_189 = arith.constant 3 : index
    %390 = memref.load %arg4[%c3_188, %c3_189] : memref<6x6xf32, #tpu.memory_space<smem>>
    %391 = vector.broadcast %390 : f32 to vector<8x128xf32>
    %392 = arith.mulf %291, %391 : vector<8x128xf32>
    %393 = arith.addf %389, %392 : vector<8x128xf32>
    %c3_190 = arith.constant 3 : index
    %c4_191 = arith.constant 4 : index
    %394 = memref.load %arg4[%c3_190, %c4_191] : memref<6x6xf32, #tpu.memory_space<smem>>
    %395 = vector.broadcast %394 : f32 to vector<8x128xf32>
    %396 = arith.mulf %294, %395 : vector<8x128xf32>
    %397 = arith.addf %393, %396 : vector<8x128xf32>
    %c3_192 = arith.constant 3 : index
    %c5_193 = arith.constant 5 : index
    %398 = memref.load %arg4[%c3_192, %c5_193] : memref<6x6xf32, #tpu.memory_space<smem>>
    %399 = vector.broadcast %398 : f32 to vector<8x128xf32>
    %400 = arith.mulf %297, %399 : vector<8x128xf32>
    %401 = arith.addf %397, %400 : vector<8x128xf32>
    %c4_194 = arith.constant 4 : index
    %c0_195 = arith.constant 0 : index
    %402 = memref.load %arg4[%c4_194, %c0_195] : memref<6x6xf32, #tpu.memory_space<smem>>
    %403 = vector.broadcast %402 : f32 to vector<8x128xf32>
    %404 = arith.mulf %282, %403 : vector<8x128xf32>
    %c4_196 = arith.constant 4 : index
    %405 = memref.load %arg5[%c4_196] : memref<6xf32, #tpu.memory_space<smem>>
    %406 = vector.broadcast %405 : f32 to vector<8x128xf32>
    %407 = arith.addf %404, %406 : vector<8x128xf32>
    %c4_197 = arith.constant 4 : index
    %c1_198 = arith.constant 1 : index
    %408 = memref.load %arg4[%c4_197, %c1_198] : memref<6x6xf32, #tpu.memory_space<smem>>
    %409 = vector.broadcast %408 : f32 to vector<8x128xf32>
    %410 = arith.mulf %285, %409 : vector<8x128xf32>
    %411 = arith.addf %407, %410 : vector<8x128xf32>
    %c4_199 = arith.constant 4 : index
    %c2_200 = arith.constant 2 : index
    %412 = memref.load %arg4[%c4_199, %c2_200] : memref<6x6xf32, #tpu.memory_space<smem>>
    %413 = vector.broadcast %412 : f32 to vector<8x128xf32>
    %414 = arith.mulf %288, %413 : vector<8x128xf32>
    %415 = arith.addf %411, %414 : vector<8x128xf32>
    %c4_201 = arith.constant 4 : index
    %c3_202 = arith.constant 3 : index
    %416 = memref.load %arg4[%c4_201, %c3_202] : memref<6x6xf32, #tpu.memory_space<smem>>
    %417 = vector.broadcast %416 : f32 to vector<8x128xf32>
    %418 = arith.mulf %291, %417 : vector<8x128xf32>
    %419 = arith.addf %415, %418 : vector<8x128xf32>
    %c4_203 = arith.constant 4 : index
    %c4_204 = arith.constant 4 : index
    %420 = memref.load %arg4[%c4_203, %c4_204] : memref<6x6xf32, #tpu.memory_space<smem>>
    %421 = vector.broadcast %420 : f32 to vector<8x128xf32>
    %422 = arith.mulf %294, %421 : vector<8x128xf32>
    %423 = arith.addf %419, %422 : vector<8x128xf32>
    %c4_205 = arith.constant 4 : index
    %c5_206 = arith.constant 5 : index
    %424 = memref.load %arg4[%c4_205, %c5_206] : memref<6x6xf32, #tpu.memory_space<smem>>
    %425 = vector.broadcast %424 : f32 to vector<8x128xf32>
    %426 = arith.mulf %297, %425 : vector<8x128xf32>
    %427 = arith.addf %423, %426 : vector<8x128xf32>
    %c5_207 = arith.constant 5 : index
    %c0_208 = arith.constant 0 : index
    %428 = memref.load %arg4[%c5_207, %c0_208] : memref<6x6xf32, #tpu.memory_space<smem>>
    %429 = vector.broadcast %428 : f32 to vector<8x128xf32>
    %430 = arith.mulf %282, %429 : vector<8x128xf32>
    %c5_209 = arith.constant 5 : index
    %431 = memref.load %arg5[%c5_209] : memref<6xf32, #tpu.memory_space<smem>>
    %432 = vector.broadcast %431 : f32 to vector<8x128xf32>
    %433 = arith.addf %430, %432 : vector<8x128xf32>
    %c5_210 = arith.constant 5 : index
    %c1_211 = arith.constant 1 : index
    %434 = memref.load %arg4[%c5_210, %c1_211] : memref<6x6xf32, #tpu.memory_space<smem>>
    %435 = vector.broadcast %434 : f32 to vector<8x128xf32>
    %436 = arith.mulf %285, %435 : vector<8x128xf32>
    %437 = arith.addf %433, %436 : vector<8x128xf32>
    %c5_212 = arith.constant 5 : index
    %c2_213 = arith.constant 2 : index
    %438 = memref.load %arg4[%c5_212, %c2_213] : memref<6x6xf32, #tpu.memory_space<smem>>
    %439 = vector.broadcast %438 : f32 to vector<8x128xf32>
    %440 = arith.mulf %288, %439 : vector<8x128xf32>
    %441 = arith.addf %437, %440 : vector<8x128xf32>
    %c5_214 = arith.constant 5 : index
    %c3_215 = arith.constant 3 : index
    %442 = memref.load %arg4[%c5_214, %c3_215] : memref<6x6xf32, #tpu.memory_space<smem>>
    %443 = vector.broadcast %442 : f32 to vector<8x128xf32>
    %444 = arith.mulf %291, %443 : vector<8x128xf32>
    %445 = arith.addf %441, %444 : vector<8x128xf32>
    %c5_216 = arith.constant 5 : index
    %c4_217 = arith.constant 4 : index
    %446 = memref.load %arg4[%c5_216, %c4_217] : memref<6x6xf32, #tpu.memory_space<smem>>
    %447 = vector.broadcast %446 : f32 to vector<8x128xf32>
    %448 = arith.mulf %294, %447 : vector<8x128xf32>
    %449 = arith.addf %445, %448 : vector<8x128xf32>
    %c5_218 = arith.constant 5 : index
    %c5_219 = arith.constant 5 : index
    %450 = memref.load %arg4[%c5_218, %c5_219] : memref<6x6xf32, #tpu.memory_space<smem>>
    %451 = vector.broadcast %450 : f32 to vector<8x128xf32>
    %452 = arith.mulf %297, %451 : vector<8x128xf32>
    %453 = arith.addf %449, %452 : vector<8x128xf32>
    %cst_220 = arith.constant 0.00999999977 : f32
    %454 = vector.broadcast %cst_220 : f32 to vector<8x128xf32>
    %455 = arith.mulf %454, %323 : vector<8x128xf32>
    %456 = arith.maximumf %323, %455 : vector<8x128xf32>
    %cst_221 = arith.constant 0.00999999977 : f32
    %457 = vector.broadcast %cst_221 : f32 to vector<8x128xf32>
    %458 = arith.mulf %457, %349 : vector<8x128xf32>
    %459 = arith.maximumf %349, %458 : vector<8x128xf32>
    %cst_222 = arith.constant 0.00999999977 : f32
    %460 = vector.broadcast %cst_222 : f32 to vector<8x128xf32>
    %461 = arith.mulf %460, %375 : vector<8x128xf32>
    %462 = arith.maximumf %375, %461 : vector<8x128xf32>
    %cst_223 = arith.constant 0.00999999977 : f32
    %463 = vector.broadcast %cst_223 : f32 to vector<8x128xf32>
    %464 = arith.mulf %463, %401 : vector<8x128xf32>
    %465 = arith.maximumf %401, %464 : vector<8x128xf32>
    %cst_224 = arith.constant 0.00999999977 : f32
    %466 = vector.broadcast %cst_224 : f32 to vector<8x128xf32>
    %467 = arith.mulf %466, %427 : vector<8x128xf32>
    %468 = arith.maximumf %427, %467 : vector<8x128xf32>
    %cst_225 = arith.constant 0.00999999977 : f32
    %469 = vector.broadcast %cst_225 : f32 to vector<8x128xf32>
    %470 = arith.mulf %469, %453 : vector<8x128xf32>
    %471 = arith.maximumf %453, %470 : vector<8x128xf32>
    %c0_226 = arith.constant 0 : index
    %c0_227 = arith.constant 0 : index
    %472 = memref.load %arg6[%c0_226, %c0_227] : memref<6x6xf32, #tpu.memory_space<smem>>
    %473 = vector.broadcast %472 : f32 to vector<8x128xf32>
    %474 = arith.mulf %456, %473 : vector<8x128xf32>
    %c0_228 = arith.constant 0 : index
    %475 = memref.load %arg7[%c0_228] : memref<6xf32, #tpu.memory_space<smem>>
    %476 = vector.broadcast %475 : f32 to vector<8x128xf32>
    %477 = arith.addf %474, %476 : vector<8x128xf32>
    %c0_229 = arith.constant 0 : index
    %c1_230 = arith.constant 1 : index
    %478 = memref.load %arg6[%c0_229, %c1_230] : memref<6x6xf32, #tpu.memory_space<smem>>
    %479 = vector.broadcast %478 : f32 to vector<8x128xf32>
    %480 = arith.mulf %459, %479 : vector<8x128xf32>
    %481 = arith.addf %477, %480 : vector<8x128xf32>
    %c0_231 = arith.constant 0 : index
    %c2_232 = arith.constant 2 : index
    %482 = memref.load %arg6[%c0_231, %c2_232] : memref<6x6xf32, #tpu.memory_space<smem>>
    %483 = vector.broadcast %482 : f32 to vector<8x128xf32>
    %484 = arith.mulf %462, %483 : vector<8x128xf32>
    %485 = arith.addf %481, %484 : vector<8x128xf32>
    %c0_233 = arith.constant 0 : index
    %c3_234 = arith.constant 3 : index
    %486 = memref.load %arg6[%c0_233, %c3_234] : memref<6x6xf32, #tpu.memory_space<smem>>
    %487 = vector.broadcast %486 : f32 to vector<8x128xf32>
    %488 = arith.mulf %465, %487 : vector<8x128xf32>
    %489 = arith.addf %485, %488 : vector<8x128xf32>
    %c0_235 = arith.constant 0 : index
    %c4_236 = arith.constant 4 : index
    %490 = memref.load %arg6[%c0_235, %c4_236] : memref<6x6xf32, #tpu.memory_space<smem>>
    %491 = vector.broadcast %490 : f32 to vector<8x128xf32>
    %492 = arith.mulf %468, %491 : vector<8x128xf32>
    %493 = arith.addf %489, %492 : vector<8x128xf32>
    %c0_237 = arith.constant 0 : index
    %c5_238 = arith.constant 5 : index
    %494 = memref.load %arg6[%c0_237, %c5_238] : memref<6x6xf32, #tpu.memory_space<smem>>
    %495 = vector.broadcast %494 : f32 to vector<8x128xf32>
    %496 = arith.mulf %471, %495 : vector<8x128xf32>
    %497 = arith.addf %493, %496 : vector<8x128xf32>
    %c1_239 = arith.constant 1 : index
    %c0_240 = arith.constant 0 : index
    %498 = memref.load %arg6[%c1_239, %c0_240] : memref<6x6xf32, #tpu.memory_space<smem>>
    %499 = vector.broadcast %498 : f32 to vector<8x128xf32>
    %500 = arith.mulf %456, %499 : vector<8x128xf32>
    %c1_241 = arith.constant 1 : index
    %501 = memref.load %arg7[%c1_241] : memref<6xf32, #tpu.memory_space<smem>>
    %502 = vector.broadcast %501 : f32 to vector<8x128xf32>
    %503 = arith.addf %500, %502 : vector<8x128xf32>
    %c1_242 = arith.constant 1 : index
    %c1_243 = arith.constant 1 : index
    %504 = memref.load %arg6[%c1_242, %c1_243] : memref<6x6xf32, #tpu.memory_space<smem>>
    %505 = vector.broadcast %504 : f32 to vector<8x128xf32>
    %506 = arith.mulf %459, %505 : vector<8x128xf32>
    %507 = arith.addf %503, %506 : vector<8x128xf32>
    %c1_244 = arith.constant 1 : index
    %c2_245 = arith.constant 2 : index
    %508 = memref.load %arg6[%c1_244, %c2_245] : memref<6x6xf32, #tpu.memory_space<smem>>
    %509 = vector.broadcast %508 : f32 to vector<8x128xf32>
    %510 = arith.mulf %462, %509 : vector<8x128xf32>
    %511 = arith.addf %507, %510 : vector<8x128xf32>
    %c1_246 = arith.constant 1 : index
    %c3_247 = arith.constant 3 : index
    %512 = memref.load %arg6[%c1_246, %c3_247] : memref<6x6xf32, #tpu.memory_space<smem>>
    %513 = vector.broadcast %512 : f32 to vector<8x128xf32>
    %514 = arith.mulf %465, %513 : vector<8x128xf32>
    %515 = arith.addf %511, %514 : vector<8x128xf32>
    %c1_248 = arith.constant 1 : index
    %c4_249 = arith.constant 4 : index
    %516 = memref.load %arg6[%c1_248, %c4_249] : memref<6x6xf32, #tpu.memory_space<smem>>
    %517 = vector.broadcast %516 : f32 to vector<8x128xf32>
    %518 = arith.mulf %468, %517 : vector<8x128xf32>
    %519 = arith.addf %515, %518 : vector<8x128xf32>
    %c1_250 = arith.constant 1 : index
    %c5_251 = arith.constant 5 : index
    %520 = memref.load %arg6[%c1_250, %c5_251] : memref<6x6xf32, #tpu.memory_space<smem>>
    %521 = vector.broadcast %520 : f32 to vector<8x128xf32>
    %522 = arith.mulf %471, %521 : vector<8x128xf32>
    %523 = arith.addf %519, %522 : vector<8x128xf32>
    %c2_252 = arith.constant 2 : index
    %c0_253 = arith.constant 0 : index
    %524 = memref.load %arg6[%c2_252, %c0_253] : memref<6x6xf32, #tpu.memory_space<smem>>
    %525 = vector.broadcast %524 : f32 to vector<8x128xf32>
    %526 = arith.mulf %456, %525 : vector<8x128xf32>
    %c2_254 = arith.constant 2 : index
    %527 = memref.load %arg7[%c2_254] : memref<6xf32, #tpu.memory_space<smem>>
    %528 = vector.broadcast %527 : f32 to vector<8x128xf32>
    %529 = arith.addf %526, %528 : vector<8x128xf32>
    %c2_255 = arith.constant 2 : index
    %c1_256 = arith.constant 1 : index
    %530 = memref.load %arg6[%c2_255, %c1_256] : memref<6x6xf32, #tpu.memory_space<smem>>
    %531 = vector.broadcast %530 : f32 to vector<8x128xf32>
    %532 = arith.mulf %459, %531 : vector<8x128xf32>
    %533 = arith.addf %529, %532 : vector<8x128xf32>
    %c2_257 = arith.constant 2 : index
    %c2_258 = arith.constant 2 : index
    %534 = memref.load %arg6[%c2_257, %c2_258] : memref<6x6xf32, #tpu.memory_space<smem>>
    %535 = vector.broadcast %534 : f32 to vector<8x128xf32>
    %536 = arith.mulf %462, %535 : vector<8x128xf32>
    %537 = arith.addf %533, %536 : vector<8x128xf32>
    %c2_259 = arith.constant 2 : index
    %c3_260 = arith.constant 3 : index
    %538 = memref.load %arg6[%c2_259, %c3_260] : memref<6x6xf32, #tpu.memory_space<smem>>
    %539 = vector.broadcast %538 : f32 to vector<8x128xf32>
    %540 = arith.mulf %465, %539 : vector<8x128xf32>
    %541 = arith.addf %537, %540 : vector<8x128xf32>
    %c2_261 = arith.constant 2 : index
    %c4_262 = arith.constant 4 : index
    %542 = memref.load %arg6[%c2_261, %c4_262] : memref<6x6xf32, #tpu.memory_space<smem>>
    %543 = vector.broadcast %542 : f32 to vector<8x128xf32>
    %544 = arith.mulf %468, %543 : vector<8x128xf32>
    %545 = arith.addf %541, %544 : vector<8x128xf32>
    %c2_263 = arith.constant 2 : index
    %c5_264 = arith.constant 5 : index
    %546 = memref.load %arg6[%c2_263, %c5_264] : memref<6x6xf32, #tpu.memory_space<smem>>
    %547 = vector.broadcast %546 : f32 to vector<8x128xf32>
    %548 = arith.mulf %471, %547 : vector<8x128xf32>
    %549 = arith.addf %545, %548 : vector<8x128xf32>
    %c3_265 = arith.constant 3 : index
    %c0_266 = arith.constant 0 : index
    %550 = memref.load %arg6[%c3_265, %c0_266] : memref<6x6xf32, #tpu.memory_space<smem>>
    %551 = vector.broadcast %550 : f32 to vector<8x128xf32>
    %552 = arith.mulf %456, %551 : vector<8x128xf32>
    %c3_267 = arith.constant 3 : index
    %553 = memref.load %arg7[%c3_267] : memref<6xf32, #tpu.memory_space<smem>>
    %554 = vector.broadcast %553 : f32 to vector<8x128xf32>
    %555 = arith.addf %552, %554 : vector<8x128xf32>
    %c3_268 = arith.constant 3 : index
    %c1_269 = arith.constant 1 : index
    %556 = memref.load %arg6[%c3_268, %c1_269] : memref<6x6xf32, #tpu.memory_space<smem>>
    %557 = vector.broadcast %556 : f32 to vector<8x128xf32>
    %558 = arith.mulf %459, %557 : vector<8x128xf32>
    %559 = arith.addf %555, %558 : vector<8x128xf32>
    %c3_270 = arith.constant 3 : index
    %c2_271 = arith.constant 2 : index
    %560 = memref.load %arg6[%c3_270, %c2_271] : memref<6x6xf32, #tpu.memory_space<smem>>
    %561 = vector.broadcast %560 : f32 to vector<8x128xf32>
    %562 = arith.mulf %462, %561 : vector<8x128xf32>
    %563 = arith.addf %559, %562 : vector<8x128xf32>
    %c3_272 = arith.constant 3 : index
    %c3_273 = arith.constant 3 : index
    %564 = memref.load %arg6[%c3_272, %c3_273] : memref<6x6xf32, #tpu.memory_space<smem>>
    %565 = vector.broadcast %564 : f32 to vector<8x128xf32>
    %566 = arith.mulf %465, %565 : vector<8x128xf32>
    %567 = arith.addf %563, %566 : vector<8x128xf32>
    %c3_274 = arith.constant 3 : index
    %c4_275 = arith.constant 4 : index
    %568 = memref.load %arg6[%c3_274, %c4_275] : memref<6x6xf32, #tpu.memory_space<smem>>
    %569 = vector.broadcast %568 : f32 to vector<8x128xf32>
    %570 = arith.mulf %468, %569 : vector<8x128xf32>
    %571 = arith.addf %567, %570 : vector<8x128xf32>
    %c3_276 = arith.constant 3 : index
    %c5_277 = arith.constant 5 : index
    %572 = memref.load %arg6[%c3_276, %c5_277] : memref<6x6xf32, #tpu.memory_space<smem>>
    %573 = vector.broadcast %572 : f32 to vector<8x128xf32>
    %574 = arith.mulf %471, %573 : vector<8x128xf32>
    %575 = arith.addf %571, %574 : vector<8x128xf32>
    %c4_278 = arith.constant 4 : index
    %c0_279 = arith.constant 0 : index
    %576 = memref.load %arg6[%c4_278, %c0_279] : memref<6x6xf32, #tpu.memory_space<smem>>
    %577 = vector.broadcast %576 : f32 to vector<8x128xf32>
    %578 = arith.mulf %456, %577 : vector<8x128xf32>
    %c4_280 = arith.constant 4 : index
    %579 = memref.load %arg7[%c4_280] : memref<6xf32, #tpu.memory_space<smem>>
    %580 = vector.broadcast %579 : f32 to vector<8x128xf32>
    %581 = arith.addf %578, %580 : vector<8x128xf32>
    %c4_281 = arith.constant 4 : index
    %c1_282 = arith.constant 1 : index
    %582 = memref.load %arg6[%c4_281, %c1_282] : memref<6x6xf32, #tpu.memory_space<smem>>
    %583 = vector.broadcast %582 : f32 to vector<8x128xf32>
    %584 = arith.mulf %459, %583 : vector<8x128xf32>
    %585 = arith.addf %581, %584 : vector<8x128xf32>
    %c4_283 = arith.constant 4 : index
    %c2_284 = arith.constant 2 : index
    %586 = memref.load %arg6[%c4_283, %c2_284] : memref<6x6xf32, #tpu.memory_space<smem>>
    %587 = vector.broadcast %586 : f32 to vector<8x128xf32>
    %588 = arith.mulf %462, %587 : vector<8x128xf32>
    %589 = arith.addf %585, %588 : vector<8x128xf32>
    %c4_285 = arith.constant 4 : index
    %c3_286 = arith.constant 3 : index
    %590 = memref.load %arg6[%c4_285, %c3_286] : memref<6x6xf32, #tpu.memory_space<smem>>
    %591 = vector.broadcast %590 : f32 to vector<8x128xf32>
    %592 = arith.mulf %465, %591 : vector<8x128xf32>
    %593 = arith.addf %589, %592 : vector<8x128xf32>
    %c4_287 = arith.constant 4 : index
    %c4_288 = arith.constant 4 : index
    %594 = memref.load %arg6[%c4_287, %c4_288] : memref<6x6xf32, #tpu.memory_space<smem>>
    %595 = vector.broadcast %594 : f32 to vector<8x128xf32>
    %596 = arith.mulf %468, %595 : vector<8x128xf32>
    %597 = arith.addf %593, %596 : vector<8x128xf32>
    %c4_289 = arith.constant 4 : index
    %c5_290 = arith.constant 5 : index
    %598 = memref.load %arg6[%c4_289, %c5_290] : memref<6x6xf32, #tpu.memory_space<smem>>
    %599 = vector.broadcast %598 : f32 to vector<8x128xf32>
    %600 = arith.mulf %471, %599 : vector<8x128xf32>
    %601 = arith.addf %597, %600 : vector<8x128xf32>
    %c5_291 = arith.constant 5 : index
    %c0_292 = arith.constant 0 : index
    %602 = memref.load %arg6[%c5_291, %c0_292] : memref<6x6xf32, #tpu.memory_space<smem>>
    %603 = vector.broadcast %602 : f32 to vector<8x128xf32>
    %604 = arith.mulf %456, %603 : vector<8x128xf32>
    %c5_293 = arith.constant 5 : index
    %605 = memref.load %arg7[%c5_293] : memref<6xf32, #tpu.memory_space<smem>>
    %606 = vector.broadcast %605 : f32 to vector<8x128xf32>
    %607 = arith.addf %604, %606 : vector<8x128xf32>
    %c5_294 = arith.constant 5 : index
    %c1_295 = arith.constant 1 : index
    %608 = memref.load %arg6[%c5_294, %c1_295] : memref<6x6xf32, #tpu.memory_space<smem>>
    %609 = vector.broadcast %608 : f32 to vector<8x128xf32>
    %610 = arith.mulf %459, %609 : vector<8x128xf32>
    %611 = arith.addf %607, %610 : vector<8x128xf32>
    %c5_296 = arith.constant 5 : index
    %c2_297 = arith.constant 2 : index
    %612 = memref.load %arg6[%c5_296, %c2_297] : memref<6x6xf32, #tpu.memory_space<smem>>
    %613 = vector.broadcast %612 : f32 to vector<8x128xf32>
    %614 = arith.mulf %462, %613 : vector<8x128xf32>
    %615 = arith.addf %611, %614 : vector<8x128xf32>
    %c5_298 = arith.constant 5 : index
    %c3_299 = arith.constant 3 : index
    %616 = memref.load %arg6[%c5_298, %c3_299] : memref<6x6xf32, #tpu.memory_space<smem>>
    %617 = vector.broadcast %616 : f32 to vector<8x128xf32>
    %618 = arith.mulf %465, %617 : vector<8x128xf32>
    %619 = arith.addf %615, %618 : vector<8x128xf32>
    %c5_300 = arith.constant 5 : index
    %c4_301 = arith.constant 4 : index
    %620 = memref.load %arg6[%c5_300, %c4_301] : memref<6x6xf32, #tpu.memory_space<smem>>
    %621 = vector.broadcast %620 : f32 to vector<8x128xf32>
    %622 = arith.mulf %468, %621 : vector<8x128xf32>
    %623 = arith.addf %619, %622 : vector<8x128xf32>
    %c5_302 = arith.constant 5 : index
    %c5_303 = arith.constant 5 : index
    %624 = memref.load %arg6[%c5_302, %c5_303] : memref<6x6xf32, #tpu.memory_space<smem>>
    %625 = vector.broadcast %624 : f32 to vector<8x128xf32>
    %626 = arith.mulf %471, %625 : vector<8x128xf32>
    %627 = arith.addf %623, %626 : vector<8x128xf32>
    %cst_304 = arith.constant 0.00999999977 : f32
    %628 = vector.broadcast %cst_304 : f32 to vector<8x128xf32>
    %629 = arith.mulf %628, %497 : vector<8x128xf32>
    %630 = arith.maximumf %497, %629 : vector<8x128xf32>
    %cst_305 = arith.constant 0.00999999977 : f32
    %631 = vector.broadcast %cst_305 : f32 to vector<8x128xf32>
    %632 = arith.mulf %631, %523 : vector<8x128xf32>
    %633 = arith.maximumf %523, %632 : vector<8x128xf32>
    %cst_306 = arith.constant 0.00999999977 : f32
    %634 = vector.broadcast %cst_306 : f32 to vector<8x128xf32>
    %635 = arith.mulf %634, %549 : vector<8x128xf32>
    %636 = arith.maximumf %549, %635 : vector<8x128xf32>
    %cst_307 = arith.constant 0.00999999977 : f32
    %637 = vector.broadcast %cst_307 : f32 to vector<8x128xf32>
    %638 = arith.mulf %637, %575 : vector<8x128xf32>
    %639 = arith.maximumf %575, %638 : vector<8x128xf32>
    %cst_308 = arith.constant 0.00999999977 : f32
    %640 = vector.broadcast %cst_308 : f32 to vector<8x128xf32>
    %641 = arith.mulf %640, %601 : vector<8x128xf32>
    %642 = arith.maximumf %601, %641 : vector<8x128xf32>
    %cst_309 = arith.constant 0.00999999977 : f32
    %643 = vector.broadcast %cst_309 : f32 to vector<8x128xf32>
    %644 = arith.mulf %643, %627 : vector<8x128xf32>
    %645 = arith.maximumf %627, %644 : vector<8x128xf32>
    %c0_310 = arith.constant 0 : index
    %c0_311 = arith.constant 0 : index
    %646 = memref.load %arg8[%c0_310, %c0_311] : memref<4x6xf32, #tpu.memory_space<smem>>
    %647 = vector.broadcast %646 : f32 to vector<8x128xf32>
    %648 = arith.mulf %630, %647 : vector<8x128xf32>
    %c0_312 = arith.constant 0 : index
    %649 = memref.load %arg9[%c0_312] : memref<4xf32, #tpu.memory_space<smem>>
    %650 = vector.broadcast %649 : f32 to vector<8x128xf32>
    %651 = arith.addf %648, %650 : vector<8x128xf32>
    %c0_313 = arith.constant 0 : index
    %c1_314 = arith.constant 1 : index
    %652 = memref.load %arg8[%c0_313, %c1_314] : memref<4x6xf32, #tpu.memory_space<smem>>
    %653 = vector.broadcast %652 : f32 to vector<8x128xf32>
    %654 = arith.mulf %633, %653 : vector<8x128xf32>
    %655 = arith.addf %651, %654 : vector<8x128xf32>
    %c0_315 = arith.constant 0 : index
    %c2_316 = arith.constant 2 : index
    %656 = memref.load %arg8[%c0_315, %c2_316] : memref<4x6xf32, #tpu.memory_space<smem>>
    %657 = vector.broadcast %656 : f32 to vector<8x128xf32>
    %658 = arith.mulf %636, %657 : vector<8x128xf32>
    %659 = arith.addf %655, %658 : vector<8x128xf32>
    %c0_317 = arith.constant 0 : index
    %c3_318 = arith.constant 3 : index
    %660 = memref.load %arg8[%c0_317, %c3_318] : memref<4x6xf32, #tpu.memory_space<smem>>
    %661 = vector.broadcast %660 : f32 to vector<8x128xf32>
    %662 = arith.mulf %639, %661 : vector<8x128xf32>
    %663 = arith.addf %659, %662 : vector<8x128xf32>
    %c0_319 = arith.constant 0 : index
    %c4_320 = arith.constant 4 : index
    %664 = memref.load %arg8[%c0_319, %c4_320] : memref<4x6xf32, #tpu.memory_space<smem>>
    %665 = vector.broadcast %664 : f32 to vector<8x128xf32>
    %666 = arith.mulf %642, %665 : vector<8x128xf32>
    %667 = arith.addf %663, %666 : vector<8x128xf32>
    %c0_321 = arith.constant 0 : index
    %c5_322 = arith.constant 5 : index
    %668 = memref.load %arg8[%c0_321, %c5_322] : memref<4x6xf32, #tpu.memory_space<smem>>
    %669 = vector.broadcast %668 : f32 to vector<8x128xf32>
    %670 = arith.mulf %645, %669 : vector<8x128xf32>
    %671 = arith.addf %667, %670 : vector<8x128xf32>
    %c1_323 = arith.constant 1 : index
    %c0_324 = arith.constant 0 : index
    %672 = memref.load %arg8[%c1_323, %c0_324] : memref<4x6xf32, #tpu.memory_space<smem>>
    %673 = vector.broadcast %672 : f32 to vector<8x128xf32>
    %674 = arith.mulf %630, %673 : vector<8x128xf32>
    %c1_325 = arith.constant 1 : index
    %675 = memref.load %arg9[%c1_325] : memref<4xf32, #tpu.memory_space<smem>>
    %676 = vector.broadcast %675 : f32 to vector<8x128xf32>
    %677 = arith.addf %674, %676 : vector<8x128xf32>
    %c1_326 = arith.constant 1 : index
    %c1_327 = arith.constant 1 : index
    %678 = memref.load %arg8[%c1_326, %c1_327] : memref<4x6xf32, #tpu.memory_space<smem>>
    %679 = vector.broadcast %678 : f32 to vector<8x128xf32>
    %680 = arith.mulf %633, %679 : vector<8x128xf32>
    %681 = arith.addf %677, %680 : vector<8x128xf32>
    %c1_328 = arith.constant 1 : index
    %c2_329 = arith.constant 2 : index
    %682 = memref.load %arg8[%c1_328, %c2_329] : memref<4x6xf32, #tpu.memory_space<smem>>
    %683 = vector.broadcast %682 : f32 to vector<8x128xf32>
    %684 = arith.mulf %636, %683 : vector<8x128xf32>
    %685 = arith.addf %681, %684 : vector<8x128xf32>
    %c1_330 = arith.constant 1 : index
    %c3_331 = arith.constant 3 : index
    %686 = memref.load %arg8[%c1_330, %c3_331] : memref<4x6xf32, #tpu.memory_space<smem>>
    %687 = vector.broadcast %686 : f32 to vector<8x128xf32>
    %688 = arith.mulf %639, %687 : vector<8x128xf32>
    %689 = arith.addf %685, %688 : vector<8x128xf32>
    %c1_332 = arith.constant 1 : index
    %c4_333 = arith.constant 4 : index
    %690 = memref.load %arg8[%c1_332, %c4_333] : memref<4x6xf32, #tpu.memory_space<smem>>
    %691 = vector.broadcast %690 : f32 to vector<8x128xf32>
    %692 = arith.mulf %642, %691 : vector<8x128xf32>
    %693 = arith.addf %689, %692 : vector<8x128xf32>
    %c1_334 = arith.constant 1 : index
    %c5_335 = arith.constant 5 : index
    %694 = memref.load %arg8[%c1_334, %c5_335] : memref<4x6xf32, #tpu.memory_space<smem>>
    %695 = vector.broadcast %694 : f32 to vector<8x128xf32>
    %696 = arith.mulf %645, %695 : vector<8x128xf32>
    %697 = arith.addf %693, %696 : vector<8x128xf32>
    %c2_336 = arith.constant 2 : index
    %c0_337 = arith.constant 0 : index
    %698 = memref.load %arg8[%c2_336, %c0_337] : memref<4x6xf32, #tpu.memory_space<smem>>
    %699 = vector.broadcast %698 : f32 to vector<8x128xf32>
    %700 = arith.mulf %630, %699 : vector<8x128xf32>
    %c2_338 = arith.constant 2 : index
    %701 = memref.load %arg9[%c2_338] : memref<4xf32, #tpu.memory_space<smem>>
    %702 = vector.broadcast %701 : f32 to vector<8x128xf32>
    %703 = arith.addf %700, %702 : vector<8x128xf32>
    %c2_339 = arith.constant 2 : index
    %c1_340 = arith.constant 1 : index
    %704 = memref.load %arg8[%c2_339, %c1_340] : memref<4x6xf32, #tpu.memory_space<smem>>
    %705 = vector.broadcast %704 : f32 to vector<8x128xf32>
    %706 = arith.mulf %633, %705 : vector<8x128xf32>
    %707 = arith.addf %703, %706 : vector<8x128xf32>
    %c2_341 = arith.constant 2 : index
    %c2_342 = arith.constant 2 : index
    %708 = memref.load %arg8[%c2_341, %c2_342] : memref<4x6xf32, #tpu.memory_space<smem>>
    %709 = vector.broadcast %708 : f32 to vector<8x128xf32>
    %710 = arith.mulf %636, %709 : vector<8x128xf32>
    %711 = arith.addf %707, %710 : vector<8x128xf32>
    %c2_343 = arith.constant 2 : index
    %c3_344 = arith.constant 3 : index
    %712 = memref.load %arg8[%c2_343, %c3_344] : memref<4x6xf32, #tpu.memory_space<smem>>
    %713 = vector.broadcast %712 : f32 to vector<8x128xf32>
    %714 = arith.mulf %639, %713 : vector<8x128xf32>
    %715 = arith.addf %711, %714 : vector<8x128xf32>
    %c2_345 = arith.constant 2 : index
    %c4_346 = arith.constant 4 : index
    %716 = memref.load %arg8[%c2_345, %c4_346] : memref<4x6xf32, #tpu.memory_space<smem>>
    %717 = vector.broadcast %716 : f32 to vector<8x128xf32>
    %718 = arith.mulf %642, %717 : vector<8x128xf32>
    %719 = arith.addf %715, %718 : vector<8x128xf32>
    %c2_347 = arith.constant 2 : index
    %c5_348 = arith.constant 5 : index
    %720 = memref.load %arg8[%c2_347, %c5_348] : memref<4x6xf32, #tpu.memory_space<smem>>
    %721 = vector.broadcast %720 : f32 to vector<8x128xf32>
    %722 = arith.mulf %645, %721 : vector<8x128xf32>
    %723 = arith.addf %719, %722 : vector<8x128xf32>
    %c3_349 = arith.constant 3 : index
    %c0_350 = arith.constant 0 : index
    %724 = memref.load %arg8[%c3_349, %c0_350] : memref<4x6xf32, #tpu.memory_space<smem>>
    %725 = vector.broadcast %724 : f32 to vector<8x128xf32>
    %726 = arith.mulf %630, %725 : vector<8x128xf32>
    %c3_351 = arith.constant 3 : index
    %727 = memref.load %arg9[%c3_351] : memref<4xf32, #tpu.memory_space<smem>>
    %728 = vector.broadcast %727 : f32 to vector<8x128xf32>
    %729 = arith.addf %726, %728 : vector<8x128xf32>
    %c3_352 = arith.constant 3 : index
    %c1_353 = arith.constant 1 : index
    %730 = memref.load %arg8[%c3_352, %c1_353] : memref<4x6xf32, #tpu.memory_space<smem>>
    %731 = vector.broadcast %730 : f32 to vector<8x128xf32>
    %732 = arith.mulf %633, %731 : vector<8x128xf32>
    %733 = arith.addf %729, %732 : vector<8x128xf32>
    %c3_354 = arith.constant 3 : index
    %c2_355 = arith.constant 2 : index
    %734 = memref.load %arg8[%c3_354, %c2_355] : memref<4x6xf32, #tpu.memory_space<smem>>
    %735 = vector.broadcast %734 : f32 to vector<8x128xf32>
    %736 = arith.mulf %636, %735 : vector<8x128xf32>
    %737 = arith.addf %733, %736 : vector<8x128xf32>
    %c3_356 = arith.constant 3 : index
    %c3_357 = arith.constant 3 : index
    %738 = memref.load %arg8[%c3_356, %c3_357] : memref<4x6xf32, #tpu.memory_space<smem>>
    %739 = vector.broadcast %738 : f32 to vector<8x128xf32>
    %740 = arith.mulf %639, %739 : vector<8x128xf32>
    %741 = arith.addf %737, %740 : vector<8x128xf32>
    %c3_358 = arith.constant 3 : index
    %c4_359 = arith.constant 4 : index
    %742 = memref.load %arg8[%c3_358, %c4_359] : memref<4x6xf32, #tpu.memory_space<smem>>
    %743 = vector.broadcast %742 : f32 to vector<8x128xf32>
    %744 = arith.mulf %642, %743 : vector<8x128xf32>
    %745 = arith.addf %741, %744 : vector<8x128xf32>
    %c3_360 = arith.constant 3 : index
    %c5_361 = arith.constant 5 : index
    %746 = memref.load %arg8[%c3_360, %c5_361] : memref<4x6xf32, #tpu.memory_space<smem>>
    %747 = vector.broadcast %746 : f32 to vector<8x128xf32>
    %748 = arith.mulf %645, %747 : vector<8x128xf32>
    %749 = arith.addf %745, %748 : vector<8x128xf32>
    %c0_362 = arith.constant 0 : index
    %c0_363 = arith.constant 0 : index
    %c0_364 = arith.constant 0 : index
    %750 = vector.load %arg10[%c0_362, %c0_363, %c0_364] : memref<4x8x128xf32, #tpu.memory_space<vmem>>, vector<1x8x128xf32>
    %751 = vector.shape_cast %750 : vector<1x8x128xf32> to vector<8x128xf32>
    %752 = vector.shape_cast %671 : vector<8x128xf32> to vector<1x8x128xf32>
    tpu.vector_store %arg10[%c0_362, %c0_363, %c0_364], %752 {strides = array<i32>} : memref<4x8x128xf32, #tpu.memory_space<vmem>>, vector<1x8x128xf32>,
    %c1_365 = arith.constant 1 : index
    %c0_366 = arith.constant 0 : index
    %c0_367 = arith.constant 0 : index
    %753 = vector.load %arg10[%c1_365, %c0_366, %c0_367] : memref<4x8x128xf32, #tpu.memory_space<vmem>>, vector<1x8x128xf32>
    %754 = vector.shape_cast %753 : vector<1x8x128xf32> to vector<8x128xf32>
    %755 = vector.shape_cast %697 : vector<8x128xf32> to vector<1x8x128xf32>
    tpu.vector_store %arg10[%c1_365, %c0_366, %c0_367], %755 {strides = array<i32>} : memref<4x8x128xf32, #tpu.memory_space<vmem>>, vector<1x8x128xf32>,
    %c2_368 = arith.constant 2 : index
    %c0_369 = arith.constant 0 : index
    %c0_370 = arith.constant 0 : index
    %756 = vector.load %arg10[%c2_368, %c0_369, %c0_370] : memref<4x8x128xf32, #tpu.memory_space<vmem>>, vector<1x8x128xf32>
    %757 = vector.shape_cast %756 : vector<1x8x128xf32> to vector<8x128xf32>
    %758 = vector.shape_cast %723 : vector<8x128xf32> to vector<1x8x128xf32>
    tpu.vector_store %arg10[%c2_368, %c0_369, %c0_370], %758 {strides = array<i32>} : memref<4x8x128xf32, #tpu.memory_space<vmem>>, vector<1x8x128xf32>,
    %c3_371 = arith.constant 3 : index
    %c0_372 = arith.constant 0 : index
    %c0_373 = arith.constant 0 : index
    %759 = vector.load %arg10[%c3_371, %c0_372, %c0_373] : memref<4x8x128xf32, #tpu.memory_space<vmem>>, vector<1x8x128xf32>
    %760 = vector.shape_cast %759 : vector<1x8x128xf32> to vector<8x128xf32>
    %761 = vector.shape_cast %749 : vector<8x128xf32> to vector<1x8x128xf32>
    tpu.vector_store %arg10[%c3_371, %c0_372, %c0_373], %761 {strides = array<i32>} : memref<4x8x128xf32, #tpu.memory_space<vmem>>, vector<1x8x128xf32>,
    return
  }
  func.func @transform_0(%arg0: i32) -> (i32, i32, i32) {
    %c0_i32 = arith.constant 0 : i32
    %c0_i32_0 = arith.constant 0 : i32
    %c0_i32_1 = arith.constant 0 : i32
    return %c0_i32, %arg0, %c0_i32_0 : i32, i32, i32
  }
  func.func @transform_1(%arg0: i32) -> (i32, i32) {
    %c0_i32 = arith.constant 0 : i32
    %c0_i32_0 = arith.constant 0 : i32
    %c0_i32_1 = arith.constant 0 : i32
    return %c0_i32, %c0_i32_0 : i32, i32
  }
  func.func @transform_2(%arg0: i32) -> i32 {
    %c0_i32 = arith.constant 0 : i32
    %c0_i32_0 = arith.constant 0 : i32
    return %c0_i32 : i32
  }
  func.func @transform_3(%arg0: i32) -> (i32, i32) {
    %c0_i32 = arith.constant 0 : i32
    %c0_i32_0 = arith.constant 0 : i32
    %c0_i32_1 = arith.constant 0 : i32
    return %c0_i32, %c0_i32_0 : i32, i32
  }
  func.func @transform_4(%arg0: i32) -> i32 {
    %c0_i32 = arith.constant 0 : i32
    %c0_i32_0 = arith.constant 0 : i32
    return %c0_i32 : i32
  }
  func.func @transform_5(%arg0: i32) -> (i32, i32) {
    %c0_i32 = arith.constant 0 : i32
    %c0_i32_0 = arith.constant 0 : i32
    %c0_i32_1 = arith.constant 0 : i32
    return %c0_i32, %c0_i32_0 : i32, i32
  }
  func.func @transform_6(%arg0: i32) -> i32 {
    %c0_i32 = arith.constant 0 : i32
    %c0_i32_0 = arith.constant 0 : i32
    return %c0_i32 : i32
  }
  func.func @transform_7(%arg0: i32) -> (i32, i32) {
    %c0_i32 = arith.constant 0 : i32
    %c0_i32_0 = arith.constant 0 : i32
    %c0_i32_1 = arith.constant 0 : i32
    return %c0_i32, %c0_i32_0 : i32, i32
  }
  func.func @transform_8(%arg0: i32) -> i32 {
    %c0_i32 = arith.constant 0 : i32
    %c0_i32_0 = arith.constant 0 : i32
    return %c0_i32 : i32
  }
  func.func @transform_9(%arg0: i32) -> (i32, i32, i32) {
    %c0_i32 = arith.constant 0 : i32
    %c0_i32_0 = arith.constant 0 : i32
    %c0_i32_1 = arith.constant 0 : i32
    return %c0_i32, %arg0, %c0_i32_0 : i32, i32, i32
  }
}

</mosaic_0001>

<bundles_post_ra>
// kernel: tpu_custom_call.1
= control target key start
LH: loop header
LB: loop body
LE: loop exit
PB: predicated region body
PF: predicated region fallthrough
CT: control target
= control target key end

     0   :  { %14 = vsyncpa [#allocation3], 0  ;;  %s3163_s0 = inlined_call_operand.hbm [shape: f32[5,8,128], index: 0, kind: input, shape index: {}]   ;;  %s3164_s1 = inlined_call_operand.hbm [shape: f32[6,10], index: 1, kind: input, shape index: {}]   ;;  %s3165_s2 = inlined_call_operand.vmem [shape: f32[6], index: 2, kind: input, shape index: {}]   ;;  %s3166_s3 = inlined_call_operand.vmem [shape: f32[6,6], index: 3, kind: input, shape index: {}]   ;;  %s3167_s4 = inlined_call_operand.vmem [shape: f32[6], index: 4, kind: input, shape index: {}]   ;;  %s3168_s5 = inlined_call_operand.vmem [shape: f32[6,6], index: 5, kind: input, shape index: {}]   ;;  %s3169_s6 = inlined_call_operand.hbm [shape: f32[6], index: 6, kind: input, shape index: {}]   ;;  %s3170_s7 = inlined_call_operand.vmem [shape: f32[4,6], index: 7, kind: input, shape index: {}]   ;;  %s3171_s8 = inlined_call_operand.vmem [shape: f32[4], index: 8, kind: input, shape index: {}]   ;;  %s3172_s9 = inlined_call_operand.hbm [shape: f32[4,8,128], index: 9, kind: output, shape index: {}]  }
   0x1   :  { %15 = vsyncpa [#allocation5], 0 }
   0x2   :  { %16 = vsyncpa [#allocation6], 0 }
   0x3   :  { %17 = vsyncpa [#allocation10], 0 }
   0x4   :  { %18 = vsyncpa [#allocation13], 0 }
   0x5   :  { %19 = vsyncpa [#allocation15], 0 }
   0x6   :  { %20 = vsyncpa [#allocation18], 0  ;;  %s58_s11 = sshll.u32 %s3166_s3, 4  ;;  %s59_s11 = int_to_ptr.vmem [resolvable:$true] %s58_s11 }
   0x7   :  { %21 = vsyncpa [#allocation4], 0  ;;  %s78_s14 = sshll.u32 %s3168_s5, 4  ;;  %s1741_s15 = scalar_lea.vmem %s59_s11, 128  ;;  %s79_s14 = int_to_ptr.vmem [resolvable:$true] %s78_s14 }
   0x8   :  { %p1742_p0 = scmp.ne.s32.totalorder %s59_s11, %s1741_s15  ;;  %p1746_p1 = scmp.lt.s32.totalorder %s59_s11, %s59_s11 }
   0x9   :  { %p1747_p2 = scmp.lt.s32.totalorder %s1741_s15, %s1741_s15 }
   0xb   :  { %p1748_p3 = por %p1747_p2, %p1746_p1 }
   0xd   :  { %p1749_p4 = pnand %p1748_p3, %p1742_p0 }
   0xf   :  { %1752 = shalt.err (!%p1749_p4)
}
  0x10   :  { %s1895_s16 = smov [#allocation9]   ;;  %s1753_s17 = scalar_lea.vmem %s79_s14, 128 }
  0x11   :  { %61 = dma.vmem_to_smem %s59_s11, 128, %s1895_s16, [#allocation10]  }
  0x12   :  { %p1754_p5 = scmp.ne.s32.totalorder %s79_s14, %s1753_s17  ;;  %p1758_p6 = scmp.lt.s32.totalorder %s79_s14, %s79_s14 }
  0x13   :  { %p1759_p7 = scmp.lt.s32.totalorder %s1753_s17, %s1753_s17 }
  0x15   :  { %p1760_p8 = por %p1759_p7, %p1758_p6 }
  0x17   :  { %p1761_p9 = pnand %p1760_p8, %p1754_p5 }
  0x19   :  { %1764 = shalt.err (!%p1761_p9)
}
  0x1a   :  { %s1896_s3 = smov [#allocation12]   ;;  %s1897_s5 = smov [#allocation2]  }
  0x1b   :  { %81 = dma.vmem_to_smem %s79_s14, 128, %s1896_s3, [#allocation13]  }
  0x1c   :  { %s27_s18 = sshll.u32 %s1897_s5, 4  ;;  %s1765_s21 = scalar_lea.hbm %s3163_s0, 640  ;;  %s28_s18 = int_to_ptr.vmem [resolvable:$true] %s27_s18 }
  0x1d   :  { %p1766_p10 = scmp.ne.s32.totalorder %s3163_s0, %s1765_s21  ;;  %p1769_p11 = scmp.lt.u32.totalorder %s1765_s21, %s3163_s0 }
  0x1f   :  { %p1771_p12 = pnand %p1769_p11, %p1766_p10 }
  0x21   :  { %1774 = shalt.err (!%p1771_p12)
}
  0x22   :  { %s1775_s26 = scalar_lea.vmem %s28_s18, 640  ;;  %p1780_p0 = scmp.lt.s32.totalorder %s28_s18, %s28_s18 }
  0x23   :  { %p1776_p13 = scmp.ne.s32.totalorder %s28_s18, %s1775_s26  ;;  %p1781_p1 = scmp.lt.s32.totalorder %s1775_s26, %s1775_s26 }
  0x25   :  { %p1782_p2 = por %p1781_p1, %p1780_p0 }
  0x27   :  { %p1783_p3 = pnand %p1782_p2, %p1776_p13 }
  0x29   :  { %1786 = shalt.err (!%p1783_p3)
}
  0x2a   :  { %s1898_s27 = smov 128   ;;  %s1899_s28 = smov 8  }
  0x2b   :  { %33 = dma.hbm_to_vmem [thread:$0]  %s3163_s0, 640, %s28_s18, [#allocation3], %s1898_s27, %s1898_s27, %s1899_s28  }
  0x2c   :  { %s1787_s12 = scalar_lea.hbm %s3164_s1, 128 }
  0x2d   :  { %p1788_p4 = scmp.ne.s32.totalorder %s3164_s1, %s1787_s12  ;;  %p1791_p5 = scmp.lt.u32.totalorder %s1787_s12, %s3164_s1 }
  0x2f   :  { %p1793_p6 = pnand %p1791_p5, %p1788_p4 }
  0x31   :  { %1796 = shalt.err (!%p1793_p6)
}
  0x32   :  { %s1900_s17 = smov [#allocation7]   ;;  %s48_s19 = sshll.u32 %s3165_s2, 4  ;;  %s49_s19 = int_to_ptr.vmem [resolvable:$true] %s48_s19 }
  0x33   :  { %41 = dma.hbm_to_smem %s3164_s1, 128, %s1900_s17, [#allocation5]  }
  0x34   :  { %s68_s22 = sshll.u32 %s3167_s4, 4  ;;  %s1797_s23 = scalar_lea.vmem %s49_s19, 16  ;;  %s69_s22 = int_to_ptr.vmem [resolvable:$true] %s68_s22 }
  0x35   :  { %p1798_p7 = scmp.ne.s32.totalorder %s49_s19, %s1797_s23  ;;  %p1802_p8 = scmp.lt.s32.totalorder %s49_s19, %s49_s19 }
  0x36   :  { %p1803_p9 = scmp.lt.s32.totalorder %s1797_s23, %s1797_s23 }
  0x38   :  { %p1804_p10 = por %p1803_p9, %p1802_p8 }
  0x3a   :  { %p1805_p11 = pnand %p1804_p10, %p1798_p7 }
  0x3c   :  { %1808 = shalt.err (!%p1805_p11)
}
  0x3d   :  { %s1901_s24 = smov [#allocation8]   ;;  %s1809_s1 = scalar_lea.vmem %s69_s22, 16 }
  0x3e   :  { %51 = dma.vmem_to_smem %s49_s19, 16, %s1901_s24, [#allocation6]  }
  0x3f   :  { %p1810_p12 = scmp.ne.s32.totalorder %s69_s22, %s1809_s1  ;;  %p1814_p13 = scmp.lt.s32.totalorder %s69_s22, %s69_s22 }
  0x40   :  { %p1815_p0 = scmp.lt.s32.totalorder %s1809_s1, %s1809_s1 }
  0x42   :  { %p1816_p1 = por %p1815_p0, %p1814_p13 }
  0x44   :  { %p1817_p2 = pnand %p1816_p1, %p1810_p12 }
  0x46   :  { %1820 = shalt.err (!%p1817_p2)
}
  0x47   :  { %s1902_s2 = smov [#allocation11]   ;;  %s96_s26 = sshll.u32 %s3170_s7, 4  ;;  %s97_s26 = int_to_ptr.vmem [resolvable:$true] %s96_s26 }
  0x48   :  { %71 = dma.vmem_to_smem %s69_s22, 16, %s1902_s2, [#allocation10]  }
  0x49   :  { %s1821_s10 = scalar_lea.hbm %s3169_s6, 16 }
  0x4a   :  { %p1822_p3 = scmp.ne.s32.totalorder %s3169_s6, %s1821_s10  ;;  %p1825_p4 = scmp.lt.u32.totalorder %s1821_s10, %s3169_s6 }
  0x4c   :  { %p1827_p5 = pnand %p1825_p4, %p1822_p3 }
  0x4e   :  { %1830 = shalt.err (!%p1827_p5)
}
  0x4f   :  { %s1903_s15 = smov [#allocation14]   ;;  %s1831_s7 = scalar_lea.vmem %s97_s26, 64 }
  0x50   :  { %89 = dma.hbm_to_smem %s3169_s6, 16, %s1903_s15, [#allocation15]  }
  0x51   :  { %p1832_p6 = scmp.ne.s32.totalorder %s97_s26, %s1831_s7  ;;  %p1836_p7 = scmp.lt.s32.totalorder %s97_s26, %s97_s26 }
  0x52   :  { %p1837_p8 = scmp.lt.s32.totalorder %s1831_s7, %s1831_s7 }
  0x54   :  { %p1838_p9 = por %p1837_p8, %p1836_p7 }
  0x56   :  { %p1839_p10 = pnand %p1838_p9, %p1832_p6 }
  0x58   :  { %1842 = shalt.err (!%p1839_p10)
}
  0x59   :  { %s1904_s3 = smov [#allocation16]   ;;  %s106_s18 = sshll.u32 %s3171_s8, 4  ;;  %s107_s18 = int_to_ptr.vmem [resolvable:$true] %s106_s18 }
  0x5a   :  { %99 = dma.vmem_to_smem %s97_s26, 64, %s1904_s3, [#allocation13]  }
  0x5b   :  { %s1843_s19 = scalar_lea.vmem %s107_s18, 16  ;;  %p1848_p12 = scmp.lt.s32.totalorder %s107_s18, %s107_s18 }
  0x5c   :  { %p1844_p11 = scmp.ne.s32.totalorder %s107_s18, %s1843_s19  ;;  %p1849_p13 = scmp.lt.s32.totalorder %s1843_s19, %s1843_s19 }
  0x5e   :  { %p1850_p0 = por %p1849_p13, %p1848_p12 }
  0x60   :  { %p1851_p1 = pnand %p1850_p0, %p1844_p11 }
  0x62   :  { %1854 = shalt.err (!%p1851_p1)
}
  0x63   :  { %s1905_s6 = smov [#allocation17]  }
  0x64   :  { %109 = dma.vmem_to_smem %s107_s18, 16, %s1905_s6, [#allocation18]  }
  0x65   :  { %1877 = dma.done.wait [#allocation3], 640  }
  0x66   :  { %1878 = vsyncadd [#allocation3], 4294966656 }
  0x67   :  { %1879 = dma.done.wait [#allocation5], 128  }
  0x68   :  { %1880 = vsyncadd [#allocation5], 4294967168 }
  0x69   :  { %1881 = dma.done.wait [#allocation6], 16  }
  0x6a   :  { %1882 = vsyncadd [#allocation6], 4294967280 }
  0x6b   :  { %1883 = dma.done.wait [#allocation10], 144  }
  0x6c   :  { %1884 = vsyncadd [#allocation10], 4294967152 }
  0x6d   :  { %1885 = dma.done.wait [#allocation13], 128  }
  0x6e   :  { %1886 = vsyncadd [#allocation13], 4294967168 }
  0x6f   :  { %1887 = dma.done.wait [#allocation15], 16  }
  0x70   :  { %1888 = vsyncadd [#allocation15], 4294967280 }
  0x71   :  { %1889 = dma.done.wait [#allocation13], 64  }
  0x72   :  { %1890 = vsyncadd [#allocation13], 4294967232 }
  0x73   :  { %1891 = dma.done.wait [#allocation18], 16  }
  0x74   :  { %1892 = vsyncadd [#allocation18], 4294967280 }
  0x75   :  { %137 = sfence }
  0x76   :  { %v139_v0 = vld [vmem:[#allocation2 + $0x20] sm:$0xff]  ;;  %v1906_v29 = vmov 683565275   ;;  %v1907_v31 = vmov 2475754826   ;;  %s2095_s8 = sld [smem:[#allocation7]] }
  0x77   :  { %v2020_v1 = vmul.f32 1000.0, %v139_v0  ;;  %v2024_v4 = vmul.f32 46.41589, %v139_v0  ;;  %v2026_v5 = vmul.f32 2.1544347, %v139_v0  ;;  %s2102_s20 = sld [smem:[#allocation8]] }
  0x78   :  { %v1908_v33 = vmov 2131351028   ;;  %v1909_v35 = vmov 2102212464   ;;  %v1910_v37 = vmov 920167782  }
  0x79   :  { %v148_v2 = vand.u32 2147483647, %v2020_v1  ;;  %v151_v3 = vand.u32 2139095040, %v2020_v1  ;;  %v252_v8 = vand.u32 2147483647, %v2024_v4  ;;  %v255_v9 = vand.u32 2139095040, %v2024_v4 }
  0x7a   :  { %v359_v13 = vand.u32 2139095040, %v2026_v5  ;;  %v356_v18 = vand.u32 2147483647, %v2026_v5  ;;  %v1911_v44 = vmov 1326507024   ;;  %vm150_vm13 = vcmp.lt.s32.totalorder %v2020_v1, 0 }
  0x7b   :  { %v152_v6 = vshrl.u32 %v151_v3, 23  ;;  %v155_v7 = vand.u32 8388607, %v148_v2  ;;  %v256_v11 = vshrl.u32 %v255_v9, 23  ;;  %v259_v12 = vand.u32 8388607, %v252_v8 }
  0x7c   :  { %v360_v19 = vshrl.u32 %v359_v13, 23  ;;  %v2044_v27 = vand.u32 8388607, %v356_v18  ;;  %vm2147_vm14 = vcmp.le.f32.partialorder %v148_v2, 0.7853982  ;;  %s2158_s21 = sld [smem:[#allocation7 + $0x1]] }
  0x7d   :  { %v1505_v10 = vadd.s32 4294967169, %v152_v6  ;;  %v156_v14 = vor.u32 8388608, %v155_v7  ;;  %v1509_v16 = vadd.s32 4294967169, %v256_v11  ;;  %v260_v17 = vor.u32 8388608, %v259_v12  ;;  %s2176_s22 = sld [smem:[#allocation7 + $0x2]]  ;;  %s2205_s23 = sld [smem:[#allocation7 + $0x3]] }
  0x7e   :  { %v2040_v26 = vadd.s32 4294967169, %v360_v19  ;;  %s2227_s24 = sld [smem:[#allocation7 + $0x4]]  ;;  %s2237_s1 = sld [smem:[#allocation7 + $0x80]] }
  0x7f   :  { %v158_v15 = vadd.s32 1, %v1505_v10  ;;  %v262_v21 = vadd.s32 1, %v1509_v16  ;;  %v2036_v24 = vshll.u32 %v156_v14, 8  ;;  %v2038_v25 = vshll.u32 %v260_v17, 8  ;;  %s2242_s2 = sld [smem:[#allocation8 + $0x1]]  ;;  %s2249_s25 = sld [smem:[#allocation7 + $0x82]] }
  0x80   :  { %s2247_s4 = sld [smem:[#allocation7 + $0x81]]  ;;  %s2254_s26 = sld [smem:[#allocation7 + $0x5]] }
  0x81   :  { %vm159_vm0 = vcmp.gt.s32.totalorder %v158_v15, 0  ;;  %vm263_vm1 = vcmp.gt.s32.totalorder %v262_v21, 0  ;;  %s2268_s29 = sld [smem:[#allocation7 + $0x83]]  ;;  %s2273_s30 = sld [smem:[#allocation7 + $0x6]] }
  0x82   :  { %v160_v20 = vsel %vm159_vm0, %v158_v15, 0  ;;  %v264_v49 = vsel %vm263_vm1, %v262_v21, 0  ;;  %s2277_s10 = sld [smem:[#allocation7 + $0x7]]  ;;  %s2279_s11 = sld [smem:[#allocation7 + $0x8]] }
  0x83   :  { %v161_v22 = vshrl.u32 %v160_v20, 5  ;;  %v162_v23 = vand.u32 31, %v160_v20  ;;  %v265_v52 = vshrl.u32 %v264_v49, 5  ;;  %v266_v53 = vand.u32 31, %v264_v49  ;;  %s2281_s12 = sld [smem:[#allocation7 + $0x9]]  ;;  %s2292_s13 = sld [smem:[#allocation7 + $0x84]] }
  0x84   :  { %s2297_s14 = sld [smem:[#allocation7 + $0x85]]  ;;  %s2306_s15 = sld [smem:[#allocation7 + $0x86]] }
  0x85   :  { %v163_v28 = vsub.s32 32, %v162_v23  ;;  %v165_v30 = vshll.u32 %v1906_v29, %v162_v23  ;;  %v168_v32 = vshll.u32 %v1907_v31, %v162_v23  ;;  %v171_v34 = vshll.u32 %v1908_v33, %v162_v23  ;;  %s2313_s16 = sld [smem:[#allocation7 + $0x87]]  ;;  %s2319_s17 = sld [smem:[#allocation7 + $0x88]] }
  0x86   :  { %v174_v36 = vshll.u32 %v1909_v35, %v162_v23  ;;  %v177_v38 = vshll.u32 %v1910_v37, %v162_v23  ;;  %vm180_vm2 = vcmp.lt.s32.totalorder %v161_v22, 1  ;;  %vm181_vm3 = vcmp.lt.s32.totalorder %v161_v22, 2  ;;  %s2325_s7 = sld [smem:[#allocation7 + $0x89]]  ;;  %s2329_s3 = sld [smem:[#allocation7 + $0x100]] }
  0x87   :  { %v164_v39 = vshrl.u32 %v1906_v29, %v163_v28  ;;  %v166_v40 = vshrl.u32 %v1907_v31, %v163_v28  ;;  %v169_v41 = vshrl.u32 %v1908_v33, %v163_v28  ;;  %v172_v42 = vshrl.u32 %v1909_v35, %v163_v28  ;;  %s2343_s5 = sld [smem:[#allocation8 + $0x2]]  ;;  %s2348_s0 = sld [smem:[#allocation7 + $0x101]] }
  0x88   :  { %v175_v43 = vshrl.u32 %v1910_v37, %v163_v28  ;;  %v178_v45 = vshrl.u32 %v1911_v44, %v163_v28  ;;  %vm182_vm4 = vcmp.lt.s32.totalorder %v161_v22, 3  ;;  %vm183_vm5 = vcmp.lt.s32.totalorder %v161_v22, 4  ;;  %s2350_s18 = sld [smem:[#allocation7 + $0x102]]  ;;  %s2359_s19 = sld [smem:[#allocation7 + $0x103]] }
  0x89   :  { %v167_v46 = vor.u32 %v166_v40, %v165_v30  ;;  %v170_v47 = vor.u32 %v169_v41, %v168_v32  ;;  %v173_v48 = vor.u32 %v172_v42, %v171_v34  ;;  %v267_v61 = vsub.s32 32, %v266_v53  ;;  %s2368_s6 = sld [smem:[#allocation7 + $0x104]] }
  0x8a   :  { %v176_v50 = vor.u32 %v175_v43, %v174_v36  ;;  %v179_v51 = vor.u32 %v178_v45, %v177_v38  ;;  %v269_v3 = vshll.u32 %v1906_v29, %v266_v53  ;;  %v272_v16 = vshll.u32 %v1907_v31, %v266_v53 }
  0x8b   :  { %v184_v54 = vsel %vm180_vm2, %v164_v39, %v167_v46  ;;  %v185_v55 = vsel %vm183_vm5, %v173_v48, 2102212464  ;;  %v188_v56 = vsel %vm180_vm2, %v167_v46, %v170_v47  ;;  %v192_v57 = vsel %vm180_vm2, %v170_v47, %v173_v48 }
  0x8c   :  { %v186_v58 = vsel %vm182_vm4, %v170_v47, %v185_v55  ;;  %v189_v59 = vsel %vm183_vm5, %v176_v50, 920167782  ;;  %v193_v60 = vsel %vm183_vm5, %v179_v51, 1326507024  ;;  %v268_v10 = vshrl.u32 %v1906_v29, %v267_v61 }
  0x8d   :  { %v187_v62 = vsel %vm181_vm3, %v184_v54, %v186_v58  ;;  %v190_v63 = vsel %vm182_vm4, %v173_v48, %v189_v59  ;;  %v194_v0 = vsel %vm182_vm4, %v176_v50, %v193_v60  ;;  %v270_v15 = vshrl.u32 %v1907_v31, %v267_v61 }
  0x8e   :  { %v191_v6 = vsel %vm181_vm3, %v188_v56, %v190_v63  ;;  %v195_v7 = vsel %vm181_vm3, %v192_v57, %v194_v0  ;;  %v203_v9 = vmul.u32 %v2036_v24, %v187_v62  ;;  %v273_v17 = vshrl.u32 %v1908_v33, %v267_v61 }
  0x8f   :  { %v2071_v11 = vmul.u32.u64.low %v2036_v24, %v195_v7  ;;  %v2072_v12 = vmul.u32.u64.high %v2036_v24, %v195_v7, %v2071_v11  ;;  %v2075_v13 = vmul.u32.u64.low %v2036_v24, %v191_v6  ;;  %v2076_v14 = vmul.u32.u64.high %v2036_v24, %v191_v6, %v2075_v13 }
  0x90   :  { %v275_v19 = vshll.u32 %v1908_v33, %v266_v53  ;;  %v276_v20 = vshrl.u32 %v1909_v35, %v267_v61  ;;  %v278_v21 = vshll.u32 %v1909_v35, %v266_v53  ;;  %v279_v22 = vshrl.u32 %v1910_v37, %v267_v61 }
  0x91   :  { %v281_v23 = vshll.u32 %v1910_v37, %v266_v53  ;;  %v271_v28 = vor.u32 %v270_v15, %v269_v3  ;;  %v274_v24 = vor.u32 %v273_v17, %v272_v16  ;;  %v282_v30 = vshrl.u32 %v1911_v44, %v267_v61 }
  0x92   :  { %vm284_vm6 = vcmp.lt.s32.totalorder %v265_v52, 1  ;;  %vm205_vm7 = vc.u32 %v2072_v12, %v2075_v13  ;;  %v206_v32 = vadd.s32 1, %v2076_v14  ;;  %v277_v34 = vor.u32 %v276_v20, %v275_v19 }
  0x93   :  { %v366_v36 = vadd.s32 1, %v2040_v26  ;;  %v280_v38 = vor.u32 %v279_v22, %v278_v21  ;;  %v283_v39 = vor.u32 %v282_v30, %v281_v23  ;;  %vm285_vm8 = vcmp.lt.s32.totalorder %v265_v52, 2 }
  0x94   :  { %vm286_vm9 = vcmp.lt.s32.totalorder %v265_v52, 3  ;;  %v207_v40 = vsel %vm205_vm7, %v206_v32, %v2076_v14  ;;  %vm287_vm10 = vcmp.lt.s32.totalorder %v265_v52, 4  ;;  %v288_v41 = vsel %vm284_vm6, %v268_v10, %v271_v28  ;;  %v2117_v52 = vld [vmem:[#allocation2] sm:$0xff] }
  0x95   :  { %v292_v42 = vsel %vm284_vm6, %v271_v28, %v274_v24  ;;  %v208_v43 = vadd.s32 %v207_v40, %v203_v9  ;;  %v289_v45 = vsel %vm287_vm10, %v277_v34, 2102212464  ;;  %v293_v46 = vsel %vm287_vm10, %v280_v38, 920167782 }
  0x96   :  { %v296_v47 = vsel %vm284_vm6, %v274_v24, %v277_v34  ;;  %v290_v26 = vsel %vm286_vm9, %v274_v24, %v289_v45  ;;  %v294_v48 = vsel %vm286_vm9, %v277_v34, %v293_v46  ;;  %v297_v49 = vsel %vm287_vm10, %v283_v39, 1326507024 }
  0x97   :  { %vm367_vm11 = vcmp.gt.s32.totalorder %v366_v36, 0  ;;  %v209_v50 = vadd.s32 536870912, %v208_v43  ;;  %v295_v51 = vsel %vm285_vm8, %v292_v42, %v294_v48  ;;  %v298_v53 = vsel %vm286_vm9, %v280_v38, %v297_v49 }
  0x98   :  { %v291_v54 = vsel %vm285_vm8, %v288_v41, %v290_v26  ;;  %v299_v55 = vsel %vm285_vm8, %v296_v47, %v298_v53  ;;  %v2107_v56 = vmul.u32.u64.low %v2038_v25, %v295_v51  ;;  %v2108_v57 = vmul.u32.u64.high %v2038_v25, %v295_v51, %v2107_v56 }
  0x99   :  { %v210_v58 = vshrl.u32 %v209_v50, 30  ;;  %v2112_v59 = vmul.u32.u64.low %v2038_v25, %v299_v55  ;;  %v2113_v60 = vmul.u32.u64.high %v2038_v25, %v299_v55, %v2112_v59  ;;  %v368_v61 = vsel %vm367_vm11, %v366_v36, 0 }
  0x9a   :  { %v364_v62 = vor.u32 8388608, %v2044_v27  ;;  %v370_v63 = vand.u32 31, %v368_v61  ;;  %v307_v3 = vmul.u32 %v2038_v25, %v291_v54  ;;  %v310_v6 = vadd.s32 1, %v2108_v57 }
  0x9b   :  { %v211_v0 = vshll.u32 %v210_v58, 30  ;;  %v772_v7 = vstv %s2095_s8  ;;  %vm309_vm12 = vc.u32 %v2113_v60, %v2107_v56  ;;  %v775_v16 = vstv %s2102_s20  ;;  %s2370_s8 = sld [smem:[#allocation7 + $0x105]]  ;;  %s2401_s20 = sld [smem:[#allocation7 + $0x106]] }
  0x9c   :  { %v371_v10 = vsub.s32 32, %v370_v63  ;;  %v311_v27 = vsel %vm309_vm12, %v310_v6, %v2108_v57  ;;  %v2127_v11 = vshll.u32 %v364_v62, 8  ;;  %v2131_v15 = vmul.f32 %v772_v7, %v2117_v52 }
  0x9d   :  { %v2121_v9 = vsub.s32 %v208_v43, %v211_v0  ;;  %v312_v25 = vadd.s32 %v311_v27, %v307_v3  ;;  %v234_v17 = vsub.s32 4, %v210_v58  ;;  %v2134_v19 = vshrl.u32 %v368_v61, 5 }
  0x9e   :  { %v373_v20 = vshll.u32 %v1906_v29, %v370_v63  ;;  %v382_v21 = vshll.u32 %v1909_v35, %v370_v63  ;;  %v374_v23 = vshrl.u32 %v1907_v31, %v371_v10  ;;  %v376_v28 = vshll.u32 %v1907_v31, %v370_v63 }
  0x9f   :  { %v214_v14 = vsub.s32 0, %v2121_v9  ;;  %v377_v24 = vshrl.u32 %v1908_v33, %v371_v10  ;;  %v313_v30 = vadd.s32 536870912, %v312_v25  ;;  %v379_v32 = vshll.u32 %v1908_v33, %v370_v63 }
  0xa0   :  { %v380_v34 = vshrl.u32 %v1909_v35, %v371_v10  ;;  %v383_v36 = vshrl.u32 %v1910_v37, %v371_v10  ;;  %v204_v39 = vadd.s32 %v2075_v13, %v2072_v12  ;;  %v385_v31 = vshll.u32 %v1910_v37, %v370_v63 }
  0xa1   :  { %v1506_v22 = vmin.u32 %v214_v14, %v2121_v9  ;;  %v386_v41 = vshrl.u32 %v1911_v44, %v371_v10  ;;  %v235_v33 = vsel %vm150_vm13, %v234_v17, %v210_v58  ;;  %v314_v35 = vshrl.u32 %v313_v30, 30 }
  0xa2   :  { %v372_v42 = vshrl.u32 %v1906_v29, %v371_v10  ;;  %v384_v43 = vor.u32 %v383_v36, %v382_v21  ;;  %v375_v45 = vor.u32 %v374_v23, %v373_v20  ;;  %v378_v46 = vor.u32 %v377_v24, %v376_v28 }
  0xa3   :  { %v216_v40 = vclz %v1506_v22  ;;  %vm391_vm15 = vcmp.lt.s32.totalorder %v2134_v19, 4  ;;  %v315_v12 = vshll.u32 %v314_v35, 30  ;;  %v381_v13 = vor.u32 %v380_v34, %v379_v32 }
  0xa4   :  { %v387_v47 = vor.u32 %v386_v41, %v385_v31  ;;  %vm388_vm0 = vcmp.lt.s32.totalorder %v2134_v19, 1  ;;  %vm389_vm2 = vcmp.lt.s32.totalorder %v2134_v19, 2  ;;  %vm390_vm3 = vcmp.lt.s32.totalorder %v2134_v19, 3 }
  0xa5   :  { %v1507_v2 = vadd.s32 4294967294, %v216_v40  ;;  %v397_v29 = vsel %vm391_vm15, %v384_v43, 920167782  ;;  %vm254_vm4 = vcmp.lt.s32.totalorder %v2024_v4, 0  ;;  %v2167_v44 = vsub.s32 %v312_v25, %v315_v12 }
  0xa6   :  { %v392_v26 = vsel %vm388_vm0, %v372_v42, %v375_v45  ;;  %v393_v48 = vsel %vm391_vm15, %v381_v13, 2102212464  ;;  %v396_v53 = vsel %vm388_vm0, %v375_v45, %v378_v46  ;;  %v398_v55 = vsel %vm390_vm3, %v381_v13, %v397_v29 }
  0xa7   :  { %vm1508_vm1 = vcmp.lt.s32.totalorder %v1507_v2, 0  ;;  %v318_v54 = vsub.s32 0, %v2167_v44  ;;  %v400_v57 = vsel %vm388_vm0, %v378_v46, %v381_v13  ;;  %v401_v58 = vsel %vm391_vm15, %v387_v47, 1326507024  ;;  %v2251_v47 = vld [vmem:[#allocation2 + $0x18] sm:$0xff] }
  0xa8   :  { %v219_v37 = vsel %vm1508_vm1, 0, %v1507_v2  ;;  %v394_v62 = vsel %vm390_vm3, %v378_v46, %v393_v48  ;;  %v402_v63 = vsel %vm390_vm3, %v384_v43, %v401_v58  ;;  %v237_v0 = vsel %vm2147_vm14, 0, %v235_v33 }
  0xa9   :  { %v220_v49 = vsub.s32 32, %v219_v37  ;;  %v221_v50 = vshll.u32 %v2121_v9, %v219_v37  ;;  %v224_v51 = vsub.s32 4294967266, %v219_v37  ;;  %v1510_v3 = vmin.u32 %v318_v54, %v2167_v44  ;;  %v2195_v9 = vld [vmem:[#allocation2 + $0x8] sm:$0xff] }
  0xaa   :  { %v399_v6 = vsel %vm389_vm2, %v396_v53, %v398_v55  ;;  %v778_v7 = vstv %s2158_s21  ;;  %v338_v14 = vsub.s32 4, %v314_v35  ;;  %v403_v25 = vsel %vm389_vm2, %v400_v57, %v402_v63  ;;  %s2403_s21 = sld [smem:[#allocation7 + $0x107]] }
  0xab   :  { %v222_v59 = vshrl.u32 %v204_v39, %v220_v49  ;;  %v225_v61 = vadd.s32 127, %v224_v51  ;;  %v320_v17 = vclz %v1510_v3  ;;  %v395_v20 = vsel %vm389_vm2, %v392_v26, %v394_v62 }
  0xac   :  { %v2202_v21 = vmul.u32.u64.low %v2127_v11, %v403_v25  ;;  %v2203_v22 = vmul.u32.u64.high %v2127_v11, %v403_v25, %v2202_v21  ;;  %v2208_v24 = vmul.u32.u64.low %v2127_v11, %v399_v6  ;;  %v2209_v30 = vmul.u32.u64.high %v2127_v11, %v399_v6, %v2208_v24 }
  0xad   :  { %v223_v10 = vor.u32 %v222_v59, %v221_v50  ;;  %v226_v27 = vshll.u32 %v225_v61, 23  ;;  %vm2214_vm5 = vcmp.le.f32.partialorder %v252_v8, 0.7853982  ;;  %v1511_v19 = vadd.s32 4294967294, %v320_v17  ;;  %v2229_v8 = vld [vmem:[#allocation2 + $0x10] sm:$0xff] }
  0xae   :  { %v776_v34 = vadd.f32 %v775_v16, %v2131_v15  ;;  %v779_v36 = vmul.f32 %v778_v7, %v2195_v9  ;;  %v308_v40 = vadd.s32 %v2107_v56, %v2113_v60  ;;  %v339_v31 = vsel %vm254_vm4, %v338_v14, %v314_v35 }
  0xaf   :  { %v227_v23 = vor.u32 4788187, %v226_v27  ;;  %v230_v28 = vcvt.s32.f32 %v223_v10  ;;  %v782_v41 = vstv %s2176_s22  ;;  %v2231_v33 = vand.u32 3, %v237_v0  ;;  %s2415_s22 = sld [smem:[#allocation7 + $0x108]] }
  0xb0   :  { %vm1512_vm6 = vcmp.lt.s32.totalorder %v1511_v19, 0  ;;  %v411_v42 = vmul.u32 %v2127_v11, %v395_v20  ;;  %vm413_vm7 = vc.u32 %v2203_v22, %v2208_v24  ;;  %v414_v56 = vadd.s32 1, %v2209_v30 }
  0xb1   :  { %v228_v39 = vand.u32 2147483647, %v227_v23  ;;  %v323_v16 = vsel %vm1512_vm6, 0, %v1511_v19  ;;  %v552_v60 = vadd.s32 3, %v237_v0  ;;  %v341_v45 = vsel %vm2214_vm5, 0, %v339_v31 }
  0xb2   :  { %v324_v35 = vsub.s32 32, %v323_v16  ;;  %v325_v43 = vshll.u32 %v2167_v44, %v323_v16  ;;  %v328_v2 = vsub.s32 4294967266, %v323_v16  ;;  %vm358_vm8 = vcmp.lt.s32.totalorder %v2026_v5, 0 }
  0xb3   :  { %v231_v15 = vmul.f32 %v230_v28, %v228_v39  ;;  %v415_v46 = vsel %vm413_vm7, %v414_v56, %v2209_v30  ;;  %v780_v12 = vadd.f32 %v779_v36, %v776_v34  ;;  %v783_v13 = vmul.f32 %v782_v41, %v2229_v8 }
  0xb4   :  { %v326_v29 = vshrl.u32 %v308_v40, %v324_v35  ;;  %v329_v37 = vadd.s32 127, %v328_v2  ;;  %v416_v44 = vadd.s32 %v415_v46, %v411_v42  ;;  %v786_v26 = vstv %s2205_s23  ;;  %s2417_s23 = sld [smem:[#allocation7 + $0x109]] }
  0xb5   :  { %v232_v11 = vxor.u32 2147483648, %v231_v15  ;;  %v2258_v49 = vand.u32 3, %v341_v45  ;;  %vm2262_vm9 = vcmp.le.f32.partialorder %v356_v18, 0.7853982  ;;  %v2266_v51 = vand.u32 3, %v552_v60 }
  0xb6   :  { %v656_v53 = vadd.s32 3, %v341_v45  ;;  %v327_v55 = vor.u32 %v326_v29, %v325_v43  ;;  %v330_v57 = vshll.u32 %v329_v37, 23  ;;  %v417_v58 = vadd.s32 536870912, %v416_v44 }
  0xb7   :  { %v233_v48 = vsel %vm150_vm13, %v232_v11, %v231_v15  ;;  %v784_v18 = vadd.f32 %v783_v13, %v780_v12  ;;  %v787_v59 = vmul.f32 %v786_v26, %v2251_v47  ;;  %v790_v61 = vstv %s2227_s24  ;;  %s2419_s24 = sld [smem:[#allocation7 + $0x180]] }
  0xb8   :  { %v236_v54 = vsel %vm2147_vm14, %v2020_v1, %v233_v48  ;;  %v331_v62 = vor.u32 4788187, %v330_v57  ;;  %v334_v63 = vcvt.s32.f32 %v327_v55  ;;  %v418_v38 = vshrl.u32 %v417_v58, 30 }
  0xb9   :  { %1729 = vcosq.f32 %v236_v54  ;;  %vm246_vm10 = vcmp.eq.s32.totalorder %v2231_v33, 2  ;;  %v2286_v0 = vadd.s32 %v2208_v24, %v2203_v22  ;;  %vm558_vm11 = vcmp.eq.s32.totalorder %v2266_v51, 2 }
  0xba   :  { %1731 = vsinq.f32 %v236_v54  ;;  %v2289_v3 = vand.u32 3, %v656_v53  ;;  %v814_v6 = vstv %s2237_s1  ;;  %vm243_vm12 = vcmp.eq.s32.totalorder %v2231_v33, 0  ;;  %s2427_s1 = sld [smem:[#allocation8 + $0x3]] }
  0xbb   :  { %v332_v7 = vand.u32 2147483647, %v331_v62  ;;  %v419_v10 = vshll.u32 %v418_v38, 30  ;;  %v442_v27 = vsub.s32 4, %v418_v38  ;;  %vm555_vm13 = vcmp.eq.s32.totalorder %v2266_v51, 0 }
  0xbc   :  { %v815_v14 = vmul.f32 %v814_v6, %v2117_v52  ;;  %vm242_vm14 = vcmp.lt.s32.totalorder %v2231_v33, 2  ;;  %vm554_vm15 = vcmp.lt.s32.totalorder %v2266_v51, 2  ;;  %v2301_v25 = vadd.f32 %v787_v59, %v784_v18 }
  0xbd   :  { %v817_v17 = vstv %s2242_s2  ;;  %v820_v20 = vstv %s2247_s4  ;;  %v824_v21 = vstv %s2249_s25  ;;  %vm240_vm0 = vweird.f32 %v2020_v1  ;;  %s2429_s2 = sld [smem:[#allocation7 + $0x181]]  ;;  %s2435_s4 = sld [smem:[#allocation7 + $0x182]] }
  0xbe   :  { %v335_v22 = vmul.f32 %v334_v63, %v332_v7  ;;  %v2309_v23 = vsub.s32 %v416_v44, %v419_v10  ;;  %v443_v28 = vsel %vm358_vm8, %v442_v27, %v418_v38  ;;  %v818_v24 = vadd.f32 %v817_v17, %v815_v14  ;;  %s2437_s25 = sld [smem:[#allocation7 + $0x183]] }
  0xbf   :  { %v794_v30 = vstv %s2254_s26  ;;  %v821_v19 = vmul.f32 %v820_v20, %v2195_v9  ;;  %v825_v34 = vmul.f32 %v824_v21, %v2229_v8  ;;  %v828_v36 = vstv %s2268_s29  ;;  %s2445_s29 = sld [smem:[#allocation7 + $0x184]]  ;;  %s2485_s26 = sld [smem:[#allocation7 + $0x200]] }
  0xc0   :  { %v336_v39 = vxor.u32 2147483648, %v335_v22  ;;  %v422_v40 = vsub.s32 0, %v2309_v23  ;;  %v445_v31 = vsel %vm2262_vm9, 0, %v443_v28  ;;  %v798_v41 = vstv %s2273_s30  ;;  %s2639_s30 = sld [smem:[#allocation7 + $0x287]] }
  0xc1   :  { %v760_v42 = vadd.s32 3, %v445_v31  ;;  %v802_v15 = vstv %s2277_s10  ;;  %v806_v16 = vstv %s2279_s11  ;;  %v822_v56 = vadd.f32 %v821_v19, %v818_v24  ;;  %s2447_s10 = sld [smem:[#allocation7 + $0x185]]  ;;  %s2487_s11 = sld [smem:[#allocation8 + $0x4]] }
  0xc2   :  { %v337_v60 = vsel %vm254_vm4, %v336_v39, %v335_v22  ;;  %v1514_v35 = vmin.u32 %v422_v40, %v2309_v23  ;;  %v810_v43 = vstv %s2281_s12  ;;  %v829_v2 = vmul.f32 %v828_v36, %v2251_v47  ;;  %s2643_s12 = sld [smem:[#allocation7 + $0x288]] }
  0xc3   :  { %v1730_v45 = vpop.eup %1729  ;;  %v340_v11 = vsel %vm2214_vm5, %v2024_v4, %v337_v60  ;;  %v2339_v46 = vand.u32 3, %v445_v31  ;;  %v826_v12 = vadd.f32 %v825_v34, %v822_v56  ;;  %v832_v13 = vstv %s2292_s13  ;;  %s2457_s13 = sld [smem:[#allocation7 + $0x186]] }
  0xc4   :  { %v1732_v29 = vpop.eup %1731  ;;  %v247_v37 = vxor.u32 2147483648, %v1730_v45  ;;  %1733 = vcosq.f32 %v340_v11  ;;  %v424_v44 = vclz %v1514_v35  ;;  %v836_v26 = vstv %s2297_s14  ;;  %s2495_s14 = sld [smem:[#allocation7 + $0x201]] }
  0xc5   :  { %v244_v48 = vxor.u32 2147483648, %v1732_v29  ;;  %1735 = vsinq.f32 %v340_v11  ;;  %v2345_v53 = vand.u32 3, %v760_v42  ;;  %v840_v54 = vstv %s2306_s15  ;;  %s2645_s15 = sld [smem:[#allocation7 + $0x289]] }
  0xc6   :  { %v248_v32 = vsel %vm246_vm10, %v247_v37, %v1732_v29  ;;  %vm350_vm1 = vcmp.eq.s32.totalorder %v2258_v49, 2  ;;  %v1515_v55 = vadd.s32 4294967294, %v424_v44  ;;  %v560_v57 = vsel %vm558_vm11, %v247_v37, %v1732_v29 }
  0xc7   :  { %vm662_vm2 = vcmp.eq.s32.totalorder %v2289_v3, 2  ;;  %v844_v58 = vstv %s2313_s16  ;;  %v245_v18 = vsel %vm243_vm12, %v1730_v45, %v244_v48  ;;  %vm347_vm3 = vcmp.eq.s32.totalorder %v2258_v49, 0  ;;  %s2459_s16 = sld [smem:[#allocation7 + $0x187]] }
  0xc8   :  { %v557_v59 = vsel %vm555_vm13, %v1730_v45, %v244_v48  ;;  %vm659_vm4 = vcmp.eq.s32.totalorder %v2289_v3, 0  ;;  %v830_v62 = vadd.f32 %v829_v2, %v826_v12  ;;  %v848_v63 = vstv %s2319_s17  ;;  %s2497_s17 = sld [smem:[#allocation7 + $0x202]] }
  0xc9   :  { %v249_v38 = vsel %vm242_vm14, %v245_v18, %v248_v32  ;;  %vm346_vm5 = vcmp.lt.s32.totalorder %v2258_v49, 2  ;;  %vm1516_vm6 = vcmp.lt.s32.totalorder %v1515_v55, 0  ;;  %v561_v6 = vsel %vm554_vm15, %v557_v59, %v560_v57 }
  0xca   :  { %vm658_vm7 = vcmp.lt.s32.totalorder %v2289_v3, 2  ;;  %v852_v7 = vstv %s2325_s7  ;;  %v2381_v10 = vsel %vm240_vm0, nan, %v249_v38  ;;  %vm344_vm10 = vweird.f32 %v2024_v4  ;;  %s2652_s7 = sld [smem:[#allocation9]] }
  0xcb   :  { %v427_v27 = vsel %vm1516_vm6, 0, %v1515_v55  ;;  %v2386_v33 = vsel %vm240_vm0, nan, %v561_v6  ;;  %v856_v14 = vstv %s2329_s3  ;;  %v791_v21 = vmul.f32 %v790_v61, %v2381_v10  ;;  %s2477_s3 = sld [smem:[#allocation7 + $0x188]] }
  0xcc   :  { %v428_v17 = vsub.s32 32, %v427_v27  ;;  %v429_v51 = vshll.u32 %v2309_v23, %v427_v27  ;;  %v432_v20 = vsub.s32 4294967266, %v427_v27  ;;  %v2394_v22 = vmul.f32 %v802_v15, %v2386_v33 }
  0xcd   :  { %v833_v28 = vmul.f32 %v832_v13, %v2381_v10  ;;  %v2398_v1 = vmul.f32 %v844_v58, %v2386_v33  ;;  %v857_v24 = vmul.f32 %v856_v14, %v2117_v52  ;;  %v792_v61 = vadd.f32 %v791_v21, %v2301_v25 }
  0xce   :  { %v430_v23 = vshrl.u32 %v2286_v0, %v428_v17  ;;  %v433_v19 = vadd.s32 127, %v432_v20  ;;  %v859_v34 = vstv %s2343_s5  ;;  %v862_v40 = vstv %s2348_s0  ;;  %v1734_v42 = vpop.eup %1733  ;;  %s2479_s5 = sld [smem:[#allocation7 + $0x189]]  ;;  %s2507_s0 = sld [smem:[#allocation7 + $0x203]] }
  0xcf   :  { %v834_v36 = vadd.f32 %v833_v28, %v830_v62  ;;  %v860_v39 = vadd.f32 %v859_v34, %v857_v24  ;;  %v866_v31 = vstv %s2350_s18  ;;  %v863_v60 = vmul.f32 %v862_v40, %v2195_v9  ;;  %v1736_v2 = vpop.eup %1735  ;;  %s2509_s18 = sld [smem:[#allocation7 + $0x204]] }
  0xd0   :  { %v431_v15 = vor.u32 %v430_v23, %v429_v51  ;;  %v434_v56 = vshll.u32 %v433_v19, 23  ;;  %v867_v35 = vmul.f32 %v866_v31, %v2229_v8  ;;  %v351_v45 = vxor.u32 2147483648, %v1734_v42 }
  0xd1   :  { %v870_v0 = vstv %s2359_s19  ;;  %v874_v11 = vstv %s2368_s6  ;;  %v878_v12 = vstv %s2370_s8  ;;  %v348_v25 = vxor.u32 2147483648, %v1736_v2  ;;  %s2517_s19 = sld [smem:[#allocation7 + $0x205]]  ;;  %s2522_s6 = sld [smem:[#allocation7 + $0x206]] }
  0xd2   :  { %v435_v13 = vor.u32 4788187, %v434_v56  ;;  %v438_v29 = vcvt.s32.f32 %v431_v15  ;;  %v864_v37 = vadd.f32 %v863_v60, %v860_v39  ;;  %v352_v44 = vsel %vm350_vm1, %v351_v45, %v1736_v2  ;;  %s2524_s8 = sld [smem:[#allocation7 + $0x207]] }
  0xd3   :  { %v664_v48 = vsel %vm662_vm2, %v351_v45, %v1736_v2  ;;  %v871_v32 = vmul.f32 %v870_v0, %v2251_v47  ;;  %v875_v55 = vmul.f32 %v874_v11, %v2381_v10  ;;  %v349_v57 = vsel %vm347_vm3, %v1734_v42, %v348_v25 }
  0xd4   :  { %v436_v58 = vand.u32 2147483647, %v435_v13  ;;  %v661_v18 = vsel %vm659_vm4, %v1734_v42, %v348_v25  ;;  %v868_v59 = vadd.f32 %v867_v35, %v864_v37  ;;  %v353_v62 = vsel %vm346_vm5, %v349_v57, %v352_v44 }
  0xd5   :  { %v665_v38 = vsel %vm658_vm7, %v661_v18, %v664_v48  ;;  %v882_v6 = vstv %s2401_s20  ;;  %v886_v27 = vstv %s2403_s21  ;;  %v2451_v14 = vsel %vm344_vm10, nan, %v353_v62  ;;  %s2528_s21 = sld [smem:[#allocation7 + $0x208]] }
  0xd6   :  { %v439_v17 = vmul.f32 %v438_v29, %v436_v58  ;;  %v2455_v51 = vsel %vm344_vm10, nan, %v665_v38  ;;  %v872_v49 = vadd.f32 %v871_v32, %v868_v59  ;;  %v795_v3 = vmul.f32 %v794_v30, %v2451_v14  ;;  %s2657_s20 = sld [smem:[#allocation11]] }
  0xd7   :  { %v2467_v20 = vmul.f32 %v806_v16, %v2455_v51  ;;  %v837_v21 = vmul.f32 %v836_v26, %v2451_v14  ;;  %v2475_v4 = vmul.f32 %v848_v63, %v2455_v51  ;;  %v879_v30 = vmul.f32 %v878_v12, %v2451_v14 }
  0xd8   :  { %v440_v28 = vxor.u32 2147483648, %v439_v17  ;;  %v876_v24 = vadd.f32 %v875_v55, %v872_v49  ;;  %v2483_v23 = vmul.f32 %v886_v27, %v2386_v33  ;;  %v2489_v16 = vadd.f32 %v795_v3, %v792_v61 }
  0xd9   :  { %v2491_v26 = vadd.f32 %v837_v21, %v834_v36  ;;  %v890_v63 = vstv %s2415_s22  ;;  %v894_v19 = vstv %s2417_s23  ;;  %v898_v61 = vstv %s2419_s24  ;;  %s2530_s22 = sld [smem:[#allocation7 + $0x209]]  ;;  %s2538_s24 = sld [smem:[#allocation7 + $0x280]] }
  0xda   :  { %v441_v34 = vsel %vm358_vm8, %v440_v28, %v439_v17  ;;  %v2501_v39 = vadd.f32 %v879_v30, %v876_v24  ;;  %v2504_v40 = vmul.f32 %v890_v63, %v2455_v51  ;;  %v899_v31 = vmul.f32 %v898_v61, %v2117_v52  ;;  %s2663_s23 = sld [smem:[#allocation9 + $0x1]] }
  0xdb   :  { %v444_v36 = vsel %vm2262_vm9, %v2026_v5, %v441_v34  ;;  %v901_v42 = vstv %s2427_s1  ;;  %v904_v15 = vstv %s2429_s2  ;;  %v908_v60 = vstv %s2435_s4  ;;  %s2540_s1 = sld [smem:[#allocation8 + $0x5]]  ;;  %s2555_s2 = sld [smem:[#allocation7 + $0x281]] }
  0xdc   :  { %1737 = vcosq.f32 %v444_v36  ;;  %v905_v56 = vmul.f32 %v904_v15, %v2195_v9  ;;  %v912_v35 = vstv %s2437_s25  ;;  %v902_v50 = vadd.f32 %v901_v42, %v899_v31  ;;  %s2557_s4 = sld [smem:[#allocation7 + $0x282]]  ;;  %s2571_s25 = sld [smem:[#allocation7 + $0x283]] }
  0xdd   :  { %1739 = vsinq.f32 %v444_v36  ;;  %v909_v2 = vmul.f32 %v908_v60, %v2229_v8  ;;  %v913_v45 = vmul.f32 %v912_v35, %v2251_v47  ;;  %vm454_vm8 = vcmp.eq.s32.totalorder %v2339_v46, 2 }
  0xde   :  { %vm766_vm9 = vcmp.eq.s32.totalorder %v2345_v53, 2  ;;  %v916_v0 = vstv %s2445_s29  ;;  %v920_v11 = vstv %s2447_s10  ;;  %v924_v12 = vstv %s2457_s13  ;;  %s2596_s29 = sld [smem:[#allocation7 + $0x284]]  ;;  %s2608_s10 = sld [smem:[#allocation7 + $0x285]] }
  0xdf   :  { %v928_v25 = vstv %s2459_s16  ;;  %vm451_vm11 = vcmp.eq.s32.totalorder %v2339_v46, 0  ;;  %vm763_vm12 = vcmp.eq.s32.totalorder %v2345_v53, 0  ;;  %v906_v13 = vadd.f32 %v905_v56, %v902_v50  ;;  %s2627_s16 = sld [smem:[#allocation7 + $0x286]]  ;;  %s2668_s13 = sld [smem:[#allocation9 + $0x2]] }
  0xe0   :  { %v917_v29 = vmul.f32 %v916_v0, %v2381_v10  ;;  %v921_v37 = vmul.f32 %v920_v11, %v2451_v14  ;;  %v2547_v44 = vmul.f32 %v928_v25, %v2386_v33  ;;  %vm450_vm13 = vcmp.lt.s32.totalorder %v2339_v46, 2 }
  0xe1   :  { %vm762_vm14 = vcmp.lt.s32.totalorder %v2345_v53, 2  ;;  %v932_v48 = vstv %s2477_s3  ;;  %v936_v32 = vstv %s2479_s5  ;;  %v940_v55 = vstv %s2485_s26  ;;  %s2672_s3 = sld [smem:[#allocation9 + $0x3]]  ;;  %s2674_s5 = sld [smem:[#allocation9 + $0x4]] }
  0xe2   :  { %v943_v57 = vstv %s2487_s11  ;;  %vm448_vm15 = vweird.f32 %v2026_v5  ;;  %v910_v58 = vadd.f32 %v909_v2, %v906_v13  ;;  %v2561_v18 = vmul.f32 %v932_v48, %v2455_v51  ;;  %s2676_s26 = sld [smem:[#allocation9 + $0x5]]  ;;  %s2678_s11 = sld [smem:[#allocation9 + $0x80]] }
  0xe3   :  { %v941_v59 = vmul.f32 %v940_v55, %v2117_v52  ;;  %v946_v62 = vstv %s2495_s14  ;;  %v950_v27 = vstv %s2497_s17  ;;  %v954_v17 = vstv %s2507_s0  ;;  %s2683_s14 = sld [smem:[#allocation11 + $0x1]]  ;;  %s2690_s0 = sld [smem:[#allocation9 + $0x82]] }
  0xe4   :  { %v947_v38 = vmul.f32 %v946_v62, %v2195_v9  ;;  %v958_v49 = vstv %s2509_s18  ;;  %v914_v3 = vadd.f32 %v913_v45, %v910_v58  ;;  %v951_v28 = vmul.f32 %v950_v27, %v2229_v8  ;;  %s2685_s17 = sld [smem:[#allocation9 + $0x81]]  ;;  %s2692_s18 = sld [smem:[#allocation9 + $0x83]] }
  0xe5   :  { %v944_v21 = vadd.f32 %v943_v57, %v941_v59  ;;  %v955_v24 = vmul.f32 %v954_v17, %v2251_v47  ;;  %v959_v30 = vmul.f32 %v958_v49, %v2381_v10  ;;  %v962_v63 = vstv %s2517_s19  ;;  %s2696_s19 = sld [smem:[#allocation9 + $0x84]] }
  0xe6   :  { %v966_v34 = vstv %s2522_s6  ;;  %v970_v61 = vstv %s2524_s8  ;;  %v918_v36 = vadd.f32 %v917_v29, %v914_v3  ;;  %v963_v42 = vmul.f32 %v962_v63, %v2451_v14  ;;  %v1738_v56 = vpop.eup %1737  ;;  %s2705_s6 = sld [smem:[#allocation9 + $0x85]]  ;;  %s2707_s8 = sld [smem:[#allocation9 + $0x100]] }
  0xe7   :  { %v948_v31 = vadd.f32 %v947_v38, %v944_v21  ;;  %v2579_v15 = vmul.f32 %v970_v61, %v2386_v33  ;;  %v974_v60 = vstv %s2528_s21  ;;  %v978_v35 = vstv %s2530_s22  ;;  %v1740_v45 = vpop.eup %1739  ;;  %s2714_s21 = sld [smem:[#allocation11 + $0x2]]  ;;  %s2720_s22 = sld [smem:[#allocation9 + $0x101]] }
  0xe8   :  { %v982_v50 = vstv %s2538_s24  ;;  %v985_v2 = vstv %s2540_s1  ;;  %v455_v0 = vxor.u32 2147483648, %v1738_v56  ;;  %v922_v11 = vadd.f32 %v921_v37, %v918_v36  ;;  %s2722_s24 = sld [smem:[#allocation9 + $0x102]]  ;;  %s2727_s1 = sld [smem:[#allocation9 + $0x103]] }
  0xe9   :  { %v952_v25 = vadd.f32 %v951_v28, %v948_v31  ;;  %v2586_v13 = vmul.f32 %v974_v60, %v2455_v51  ;;  %v452_v29 = vxor.u32 2147483648, %v1740_v45  ;;  %v983_v48 = vmul.f32 %v982_v50, %v2117_v52 }
  0xea   :  { %v988_v55 = vstv %s2555_s2  ;;  %v992_v57 = vstv %s2557_s4  ;;  %v456_v58 = vsel %vm454_vm8, %v455_v0, %v1740_v45  ;;  %v768_v59 = vsel %vm766_vm9, %v455_v0, %v1740_v45  ;;  %s2732_s2 = sld [smem:[#allocation9 + $0x104]]  ;;  %s2734_s4 = sld [smem:[#allocation9 + $0x105]] }
  0xeb   :  { %v956_v62 = vadd.f32 %v955_v24, %v952_v25  ;;  %v989_v37 = vmul.f32 %v988_v55, %v2195_v9  ;;  %v453_v38 = vsel %vm451_vm11, %v1738_v56, %v452_v29  ;;  %v765_v52 = vsel %vm763_vm12, %v1738_v56, %v452_v29 }
  0xec   :  { %v986_v27 = vadd.f32 %v985_v2, %v983_v48  ;;  %v993_v17 = vmul.f32 %v992_v57, %v2229_v8  ;;  %v457_v49 = vsel %vm450_vm13, %v453_v38, %v456_v58  ;;  %v769_v9 = vsel %vm762_vm14, %v765_v52, %v768_v59 }
  0xed   :  { %v960_v3 = vadd.f32 %v959_v30, %v956_v62  ;;  %v996_v21 = vstv %s2571_s25  ;;  %v458_v28 = vsel %vm448_vm15, nan, %v457_v49  ;;  %v2614_v24 = vsel %vm448_vm15, nan, %v769_v9  ;;  %s2742_s25 = sld [smem:[#allocation9 + $0x180]] }
  0xee   :  { %v990_v8 = vadd.f32 %v989_v37, %v986_v27  ;;  %v997_v46 = vmul.f32 %v996_v21, %v2251_v47  ;;  %v799_v63 = vmul.f32 %v798_v41, %v458_v28  ;;  %v811_v53 = vmul.f32 %v810_v43, %v2614_v24 }
  0xef   :  { %v841_v30 = vmul.f32 %v840_v54, %v458_v28  ;;  %v853_v61 = vmul.f32 %v852_v7, %v2614_v24  ;;  %v883_v36 = vmul.f32 %v882_v6, %v458_v28  ;;  %v895_v5 = vmul.f32 %v894_v19, %v2614_v24 }
  0xf0   :  { %v925_v31 = vmul.f32 %v924_v12, %v458_v28  ;;  %v937_v47 = vmul.f32 %v936_v32, %v2614_v24  ;;  %v800_v41 = vadd.f32 %v799_v63, %v2489_v16  ;;  %v964_v54 = vadd.f32 %v963_v42, %v960_v3 }
  0xf1   :  { %v842_v43 = vadd.f32 %v841_v30, %v2491_v26  ;;  %v967_v7 = vmul.f32 %v966_v34, %v458_v28  ;;  %v884_v6 = vadd.f32 %v883_v36, %v2501_v39  ;;  %v979_v12 = vmul.f32 %v978_v35, %v2614_v24 }
  0xf2   :  { %v926_v19 = vadd.f32 %v925_v31, %v922_v11  ;;  %v994_v56 = vadd.f32 %v993_v17, %v990_v8  ;;  %v804_v32 = vadd.f32 %v2394_v22, %v800_v41  ;;  %v1000_v50 = vstv %s2596_s29  ;;  %s2744_s29 = sld [smem:[#allocation11 + $0x3]] }
  0xf3   :  { %v846_v60 = vadd.f32 %v2398_v1, %v842_v43  ;;  %v968_v16 = vadd.f32 %v967_v7, %v964_v54  ;;  %v888_v26 = vadd.f32 %v2483_v23, %v884_v6  ;;  %v1001_v39 = vmul.f32 %v1000_v50, %v2381_v10 }
  0xf4   :  { %v930_v34 = vadd.f32 %v2547_v44, %v926_v19  ;;  %v998_v42 = vadd.f32 %v997_v46, %v994_v56  ;;  %v808_v35 = vadd.f32 %v2467_v20, %v804_v32  ;;  %v1004_v2 = vstv %s2608_s10  ;;  %s2750_s10 = sld [smem:[#allocation9 + $0x181]] }
  0xf5   :  { %v850_v22 = vadd.f32 %v2475_v4, %v846_v60  ;;  %v972_v1 = vadd.f32 %v2579_v15, %v968_v16  ;;  %v892_v45 = vadd.f32 %v2504_v40, %v888_v26  ;;  %v1005_v0 = vmul.f32 %v1004_v2, %v2451_v14 }
  0xf6   :  { %v934_v23 = vadd.f32 %v2561_v18, %v930_v34  ;;  %v1002_v44 = vadd.f32 %v1001_v39, %v998_v42  ;;  %v812_v10 = vadd.f32 %v811_v53, %v808_v35  ;;  %v1008_v15 = vstv %s2627_s16  ;;  %s2752_s16 = sld [smem:[#allocation9 + $0x182]] }
  0xf7   :  { %v854_v20 = vadd.f32 %v853_v61, %v850_v22  ;;  %v976_v4 = vadd.f32 %v2586_v13, %v972_v1  ;;  %v896_v40 = vadd.f32 %v895_v5, %v892_v45  ;;  %v1009_v25 = vmul.f32 %v1008_v15, %v458_v28 }
  0xf8   :  { %v938_v11 = vadd.f32 %v937_v47, %v934_v23  ;;  %v1006_v18 = vadd.f32 %v1005_v0, %v1002_v44  ;;  %v1012_v29 = vstv %s2639_s30  ;;  %v1016_v48 = vstv %s2643_s12  ;;  %s2757_s30 = sld [smem:[#allocation9 + $0x183]]  ;;  %s2759_s12 = sld [smem:[#allocation9 + $0x184]] }
  0xf9   :  { %v980_v14 = vadd.f32 %v979_v12, %v976_v4  ;;  %v1020_v55 = vstv %s2645_s15  ;;  %v1013_v57 = vmul.f32 %v1012_v29, %v2386_v33  ;;  %v1017_v58 = vmul.f32 %v1016_v48, %v2455_v51  ;;  %s2767_s15 = sld [smem:[#allocation9 + $0x185]] }
  0xfa   :  { %v1010_v13 = vadd.f32 %v1009_v25, %v1006_v18  ;;  %v1021_v59 = vmul.f32 %v1020_v55, %v2614_v24  ;;  %v1023_v62 = vmul.f32 0.01, %v812_v10  ;;  %v1025_v37 = vmul.f32 0.01, %v854_v20 }
  0xfb   :  { %v1027_v38 = vmul.f32 0.01, %v896_v40  ;;  %v1036_v52 = vstv %s2652_s7  ;;  %v1029_v17 = vmul.f32 0.01, %v938_v11  ;;  %v1031_v49 = vmul.f32 0.01, %v980_v14 }
  0xfc   :  { %v1014_v27 = vadd.f32 %v1013_v57, %v1010_v13  ;;  %v1039_v9 = vstv %s2657_s20  ;;  %v2698_v33 = vmax.f32 %v812_v10, %v1023_v62  ;;  %v2700_v51 = vmax.f32 %v854_v20, %v1025_v37  ;;  %s2769_s7 = sld [smem:[#allocation9 + $0x200]]  ;;  %s2773_s20 = sld [smem:[#allocation11 + $0x4]] }
  0xfd   :  { %v2702_v3 = vmax.f32 %v896_v40, %v1027_v38  ;;  %v1042_v21 = vstv %s2663_s23  ;;  %v2709_v24 = vmax.f32 %v938_v11, %v1029_v17  ;;  %v2711_v8 = vmax.f32 %v980_v14, %v1031_v49  ;;  %s2775_s23 = sld [smem:[#allocation9 + $0x201]] }
  0xfe   :  { %v1018_v28 = vadd.f32 %v1017_v58, %v1014_v27  ;;  %v1046_v46 = vstv %s2668_s13  ;;  %v1037_v63 = vmul.f32 %v1036_v52, %v2698_v33  ;;  %v1043_v53 = vmul.f32 %v1042_v21, %v2700_v51  ;;  %s2780_s13 = sld [smem:[#allocation9 + $0x202]] }
  0xff   :  { %v1047_v30 = vmul.f32 %v1046_v46, %v2702_v3  ;;  %v1050_v61 = vstv %s2672_s3  ;;  %v1054_v31 = vstv %s2674_s5  ;;  %v1058_v47 = vstv %s2676_s26  ;;  %s2782_s3 = sld [smem:[#allocation9 + $0x203]]  ;;  %s2791_s5 = sld [smem:[#allocation9 + $0x204]] }
 0x100   :  { %v1022_v36 = vadd.f32 %v1021_v59, %v1018_v28  ;;  %v1051_v5 = vmul.f32 %v1050_v61, %v2709_v24  ;;  %v1040_v41 = vadd.f32 %v1039_v9, %v1037_v63  ;;  %v1055_v43 = vmul.f32 %v1054_v31, %v2711_v8  ;;  %s2793_s26 = sld [smem:[#allocation9 + $0x205]] }
 0x101   :  { %v1062_v54 = vstv %s2678_s11  ;;  %v1065_v7 = vstv %s2683_s14  ;;  %v1068_v12 = vstv %s2685_s17  ;;  %v1072_v56 = vstv %s2690_s0  ;;  %s2797_s11 = sld [smem:[#allocation9 + $0x280]]  ;;  %s2799_s14 = sld [smem:[#allocation11 + $0x5]] }
 0x102   :  { %v1033_v6 = vmul.f32 0.01, %v1022_v36  ;;  %v1063_v19 = vmul.f32 %v1062_v54, %v2698_v33  ;;  %v1044_v32 = vadd.f32 %v1043_v53, %v1040_v41  ;;  %v1069_v60 = vmul.f32 %v1068_v12, %v2700_v51  ;;  %s2805_s17 = sld [smem:[#allocation9 + $0x281]]  ;;  %s2807_s0 = sld [smem:[#allocation9 + $0x282]] }
 0x103   :  { %v1073_v16 = vmul.f32 %v1072_v56, %v2702_v3  ;;  %v1076_v50 = vstv %s2692_s18  ;;  %v1080_v39 = vstv %s2696_s19  ;;  %v1084_v1 = vstv %s2705_s6  ;;  %s2812_s18 = sld [smem:[#allocation9 + $0x283]]  ;;  %s2818_s19 = sld [smem:[#allocation9 + $0x284]] }
 0x104   :  { %v2746_v26 = vmax.f32 %v1022_v36, %v1033_v6  ;;  %v1066_v34 = vadd.f32 %v1065_v7, %v1063_v19  ;;  %v1077_v42 = vmul.f32 %v1076_v50, %v2709_v24  ;;  %v1048_v35 = vadd.f32 %v1047_v30, %v1044_v32  ;;  %s2820_s6 = sld [smem:[#allocation9 + $0x285]] }
 0x105   :  { %v1081_v22 = vmul.f32 %v1080_v39, %v2711_v8  ;;  %v1088_v2 = vstv %s2707_s8  ;;  %v1091_v20 = vstv %s2714_s21  ;;  %v1094_v4 = vstv %s2720_s22  ;;  %s2833_s8 = sld [smem:[#allocation12]]  ;;  %s2839_s22 = sld [smem:[#allocation12 + $0x1]] }
 0x106   :  { %v1059_v45 = vmul.f32 %v1058_v47, %v2746_v26  ;;  %v1070_v23 = vadd.f32 %v1069_v60, %v1066_v34  ;;  %v1085_v44 = vmul.f32 %v1084_v1, %v2746_v26  ;;  %v1089_v0 = vmul.f32 %v1088_v2, %v2698_v33  ;;  %s2835_s21 = sld [smem:[#allocation14]] }
 0x107   :  { %v1052_v10 = vadd.f32 %v1051_v5, %v1048_v35  ;;  %v1098_v15 = vstv %s2722_s24  ;;  %v1095_v18 = vmul.f32 %v1094_v4, %v2700_v51  ;;  %v1102_v29 = vstv %s2727_s1  ;;  %s2845_s24 = sld [smem:[#allocation12 + $0x2]]  ;;  %s2847_s1 = sld [smem:[#allocation12 + $0x3]] }
 0x108   :  { %v1074_v40 = vadd.f32 %v1073_v16, %v1070_v23  ;;  %v1092_v11 = vadd.f32 %v1091_v20, %v1089_v0  ;;  %v1099_v25 = vmul.f32 %v1098_v15, %v2702_v3  ;;  %v1106_v48 = vstv %s2732_s2  ;;  %s2851_s2 = sld [smem:[#allocation12 + $0x4]] }
 0x109   :  { %v1056_v14 = vadd.f32 %v1055_v43, %v1052_v10  ;;  %v1110_v55 = vstv %s2734_s4  ;;  %v1103_v58 = vmul.f32 %v1102_v29, %v2709_v24  ;;  %v1107_v59 = vmul.f32 %v1106_v48, %v2711_v8  ;;  %s2857_s4 = sld [smem:[#allocation12 + $0x5]] }
 0x10a   :  { %v1078_v13 = vadd.f32 %v1077_v42, %v1074_v40  ;;  %v1096_v57 = vadd.f32 %v1095_v18, %v1092_v11  ;;  %v1111_v37 = vmul.f32 %v1110_v55, %v2746_v26  ;;  %v1114_v38 = vstv %s2742_s25  ;;  %s2859_s25 = sld [smem:[#allocation12 + $0x80]] }
 0x10b   :  { %v2786_v62 = vadd.f32 %v1059_v45, %v1056_v14  ;;  %v1117_v52 = vstv %s2744_s29  ;;  %v1115_v49 = vmul.f32 %v1114_v38, %v2698_v33  ;;  %v1120_v9 = vstv %s2750_s10  ;;  %s2862_s29 = sld [smem:[#allocation14 + $0x1]] }
 0x10c   :  { %v1082_v27 = vadd.f32 %v1081_v22, %v1078_v13  ;;  %v1100_v17 = vadd.f32 %v1099_v25, %v1096_v57  ;;  %v1121_v21 = vmul.f32 %v1120_v9, %v2700_v51  ;;  %v1124_v28 = vstv %s2752_s16  ;;  %s2864_s10 = sld [smem:[#allocation12 + $0x81]]  ;;  %s2870_s16 = sld [smem:[#allocation12 + $0x82]] }
 0x10d   :  { %v1128_v46 = vstv %s2757_s30  ;;  %v1132_v63 = vstv %s2759_s12  ;;  %v1118_v61 = vadd.f32 %v1117_v52, %v1115_v49  ;;  %v1125_v36 = vmul.f32 %v1124_v28, %v2702_v3  ;;  %s2880_s30 = sld [smem:[#allocation12 + $0x83]]  ;;  %s2882_s12 = sld [smem:[#allocation12 + $0x84]] }
 0x10e   :  { %v2809_v53 = vadd.f32 %v1085_v44, %v1082_v27  ;;  %v1104_v30 = vadd.f32 %v1103_v58, %v1100_v17  ;;  %v1129_v5 = vmul.f32 %v1128_v46, %v2709_v24  ;;  %v1133_v31 = vmul.f32 %v1132_v63, %v2711_v8 }
 0x10f   :  { %v1136_v47 = vstv %s2767_s15  ;;  %v1140_v41 = vstv %s2769_s7  ;;  %v1122_v54 = vadd.f32 %v1121_v21, %v1118_v61  ;;  %v1143_v19 = vstv %s2773_s20  ;;  %s2888_s15 = sld [smem:[#allocation12 + $0x85]]  ;;  %s2894_s7 = sld [smem:[#allocation12 + $0x100]] }
 0x110   :  { %v1108_v43 = vadd.f32 %v1107_v59, %v1104_v30  ;;  %v1137_v7 = vmul.f32 %v1136_v47, %v2746_v26  ;;  %v1141_v6 = vmul.f32 %v1140_v41, %v2698_v33  ;;  %v1146_v12 = vstv %s2775_s23  ;;  %s2896_s20 = sld [smem:[#allocation14 + $0x2]]  ;;  %s2900_s23 = sld [smem:[#allocation12 + $0x101]] }
 0x111   :  { %v1150_v56 = vstv %s2780_s13  ;;  %v1154_v32 = vstv %s2782_s3  ;;  %v1126_v16 = vadd.f32 %v1125_v36, %v1122_v54  ;;  %v1147_v34 = vmul.f32 %v1146_v12, %v2700_v51  ;;  %s2902_s13 = sld [smem:[#allocation12 + $0x102]]  ;;  %s2911_s3 = sld [smem:[#allocation12 + $0x103]] }
 0x112   :  { %v1112_v60 = vadd.f32 %v1111_v37, %v1108_v43  ;;  %v1144_v50 = vadd.f32 %v1143_v19, %v1141_v6  ;;  %v1151_v42 = vmul.f32 %v1150_v56, %v2702_v3  ;;  %v1155_v39 = vmul.f32 %v1154_v32, %v2709_v24 }
 0x113   :  { %v1158_v35 = vstv %s2791_s5  ;;  %v1162_v22 = vstv %s2793_s26  ;;  %v1130_v1 = vadd.f32 %v1129_v5, %v1126_v16  ;;  %v1166_v44 = vstv %s2797_s11  ;;  %s2916_s5 = sld [smem:[#allocation12 + $0x104]]  ;;  %s2918_s26 = sld [smem:[#allocation12 + $0x105]] }
 0x114   :  { %v1148_v2 = vadd.f32 %v1147_v34, %v1144_v50  ;;  %v1159_v45 = vmul.f32 %v1158_v35, %v2711_v8  ;;  %v1163_v23 = vmul.f32 %v1162_v22, %v2746_v26  ;;  %v1169_v0 = vstv %s2799_s14  ;;  %s2923_s11 = sld [smem:[#allocation12 + $0x180]]  ;;  %s2927_s14 = sld [smem:[#allocation14 + $0x3]] }
 0x115   :  { %v1172_v10 = vstv %s2805_s17  ;;  %v1176_v20 = vstv %s2807_s0  ;;  %v1134_v4 = vadd.f32 %v1133_v31, %v1130_v1  ;;  %v1167_v40 = vmul.f32 %v1166_v44, %v2698_v33  ;;  %s2929_s17 = sld [smem:[#allocation12 + $0x181]]  ;;  %s2934_s0 = sld [smem:[#allocation12 + $0x182]] }
 0x116   :  { %v1152_v15 = vadd.f32 %v1151_v42, %v1148_v2  ;;  %v1173_v11 = vmul.f32 %v1172_v10, %v2700_v51  ;;  %v1177_v18 = vmul.f32 %v1176_v20, %v2702_v3  ;;  %v1180_v25 = vstv %s2812_s18  ;;  %s2938_s18 = sld [smem:[#allocation12 + $0x183]] }
 0x117   :  { %v1184_v14 = vstv %s2818_s19  ;;  %v1188_v29 = vstv %s2820_s6  ;;  %v1138_v48 = vadd.f32 %v1137_v7, %v1134_v4  ;;  %v1170_v13 = vadd.f32 %v1169_v0, %v1167_v40  ;;  %s2940_s19 = sld [smem:[#allocation12 + $0x184]]  ;;  %s2947_s6 = sld [smem:[#allocation12 + $0x185]] }
 0x118   :  { %v1156_v55 = vadd.f32 %v1155_v39, %v1152_v15  ;;  %v1181_v33 = vmul.f32 %v1180_v25, %v2709_v24  ;;  %v1185_v51 = vmul.f32 %v1184_v14, %v2711_v8  ;;  %v1189_v3 = vmul.f32 %v1188_v29, %v2746_v26 }
 0x119   :  { %v1191_v57 = vmul.f32 0.01, %v2786_v62  ;;  %v1193_v58 = vmul.f32 0.01, %v2809_v53  ;;  %v1174_v37 = vadd.f32 %v1173_v11, %v1170_v13  ;;  %v1195_v38 = vmul.f32 0.01, %v1112_v60 }
 0x11a   :  { %v1160_v59 = vadd.f32 %v1159_v45, %v1156_v55  ;;  %v1197_v24 = vmul.f32 0.01, %v1138_v48  ;;  %v1204_v26 = vstv %s2833_s8  ;;  %v1207_v27 = vstv %s2835_s21  ;;  %s2949_s8 = sld [smem:[#allocation12 + $0x200]]  ;;  %s2953_s21 = sld [smem:[#allocation14 + $0x4]] }
 0x11b   :  { %v2873_v52 = vmax.f32 %v2786_v62, %v1191_v57  ;;  %v2876_v8 = vmax.f32 %v2809_v53, %v1193_v58  ;;  %v1178_v49 = vadd.f32 %v1177_v18, %v1174_v37  ;;  %v2884_v9 = vmax.f32 %v1112_v60, %v1195_v38 }
 0x11c   :  { %v1164_v17 = vadd.f32 %v1163_v23, %v1160_v59  ;;  %v2886_v21 = vmax.f32 %v1138_v48, %v1197_v24  ;;  %v1210_v28 = vstv %s2839_s22  ;;  %v1214_v46 = vstv %s2845_s24  ;;  %s2955_s22 = sld [smem:[#allocation12 + $0x201]]  ;;  %s2960_s24 = sld [smem:[#allocation12 + $0x202]] }
 0x11d   :  { %v1205_v62 = vmul.f32 %v1204_v26, %v2873_v52  ;;  %v1218_v63 = vstv %s2847_s1  ;;  %v1182_v53 = vadd.f32 %v1181_v33, %v1178_v49  ;;  %v1211_v61 = vmul.f32 %v1210_v28, %v2876_v8  ;;  %s2965_s1 = sld [smem:[#allocation12 + $0x203]] }
 0x11e   :  { %v1199_v30 = vmul.f32 0.01, %v1164_v17  ;;  %v1215_v36 = vmul.f32 %v1214_v46, %v2884_v9  ;;  %v1219_v31 = vmul.f32 %v1218_v63, %v2886_v21  ;;  %v1222_v47 = vstv %s2851_s2  ;;  %s2967_s2 = sld [smem:[#allocation12 + $0x204]] }
 0x11f   :  { %v1208_v5 = vadd.f32 %v1207_v27, %v1205_v62  ;;  %v1226_v41 = vstv %s2857_s4  ;;  %v1186_v43 = vadd.f32 %v1185_v51, %v1182_v53  ;;  %v1230_v7 = vstv %s2859_s25  ;;  %s2976_s4 = sld [smem:[#allocation12 + $0x205]]  ;;  %s2978_s25 = sld [smem:[#allocation12 + $0x280]] }
 0x120   :  { %v2907_v54 = vmax.f32 %v1164_v17, %v1199_v30  ;;  %v1233_v6 = vstv %s2862_s29  ;;  %v1231_v12 = vmul.f32 %v1230_v7, %v2873_v52  ;;  %v1236_v56 = vstv %s2864_s10  ;;  %s2983_s29 = sld [smem:[#allocation14 + $0x5]]  ;;  %s2985_s10 = sld [smem:[#allocation12 + $0x281]] }
 0x121   :  { %v1212_v19 = vadd.f32 %v1211_v61, %v1208_v5  ;;  %v1240_v32 = vstv %s2870_s16  ;;  %v1190_v60 = vadd.f32 %v1189_v3, %v1186_v43  ;;  %v1237_v50 = vmul.f32 %v1236_v56, %v2876_v8  ;;  %s2992_s16 = sld [smem:[#allocation12 + $0x282]] }
 0x122   :  { %v1223_v16 = vmul.f32 %v1222_v47, %v2907_v54  ;;  %v1241_v34 = vmul.f32 %v1240_v32, %v2884_v9  ;;  %v1234_v39 = vadd.f32 %v1233_v6, %v1231_v12  ;;  %v1244_v35 = vstv %s2880_s30  ;;  %s2994_s30 = sld [smem:[#allocation12 + $0x283]] }
 0x123   :  { %v1216_v42 = vadd.f32 %v1215_v36, %v1212_v19  ;;  %v1248_v22 = vstv %s2882_s12  ;;  %v1201_v1 = vmul.f32 0.01, %v1190_v60  ;;  %v1245_v2 = vmul.f32 %v1244_v35, %v2886_v21  ;;  %s3002_s12 = sld [smem:[#allocation12 + $0x284]] }
 0x124   :  { %v1249_v45 = vmul.f32 %v1248_v22, %v2907_v54  ;;  %v1252_v23 = vstv %s2888_s15  ;;  %v1238_v0 = vadd.f32 %v1237_v50, %v1234_v39  ;;  %v1256_v10 = vstv %s2894_s7  ;;  %s3004_s15 = sld [smem:[#allocation12 + $0x285]]  ;;  %s3013_s7 = sld [smem:[#allocation16]] }
 0x125   :  { %v1220_v44 = vadd.f32 %v1219_v31, %v1216_v42  ;;  %v1259_v20 = vstv %s2896_s20  ;;  %v2942_v4 = vmax.f32 %v1190_v60, %v1201_v1  ;;  %v1257_v15 = vmul.f32 %v1256_v10, %v2873_v52  ;;  %s3019_s20 = sld [smem:[#allocation17]] }
 0x126   :  { %v1262_v40 = vstv %s2900_s23  ;;  %v1266_v11 = vstv %s2902_s13  ;;  %v1242_v25 = vadd.f32 %v1241_v34, %v1238_v0  ;;  %v1270_v33 = vstv %s2911_s3  ;;  %s3023_s23 = sld [smem:[#allocation16 + $0x1]]  ;;  %s3029_s13 = sld [smem:[#allocation16 + $0x2]] }
 0x127   :  { %v1224_v18 = vadd.f32 %v1223_v16, %v1220_v44  ;;  %v1263_v14 = vmul.f32 %v1262_v40, %v2876_v8  ;;  %v1267_v29 = vmul.f32 %v1266_v11, %v2884_v9  ;;  %v1227_v48 = vmul.f32 %v1226_v41, %v2942_v4  ;;  %s3031_s3 = sld [smem:[#allocation16 + $0x3]] }
 0x128   :  { %v1253_v55 = vmul.f32 %v1252_v23, %v2942_v4  ;;  %v1260_v13 = vadd.f32 %v1259_v20, %v1257_v15  ;;  %v1246_v51 = vadd.f32 %v1245_v2, %v1242_v25  ;;  %v1271_v3 = vmul.f32 %v1270_v33, %v2886_v21 }
 0x129   :  { %v1274_v57 = vstv %s2916_s5  ;;  %v1278_v58 = vstv %s2918_s26  ;;  %v2969_v59 = vadd.f32 %v1227_v48, %v1224_v18  ;;  %v1282_v27 = vstv %s2923_s11  ;;  %s3034_s5 = sld [smem:[#allocation16 + $0x4]]  ;;  %s3036_s26 = sld [smem:[#allocation16 + $0x80]] }
 0x12a   :  { %v1264_v37 = vadd.f32 %v1263_v14, %v1260_v13  ;;  %v1275_v38 = vmul.f32 %v1274_v57, %v2907_v54  ;;  %v1279_v24 = vmul.f32 %v1278_v58, %v2942_v4  ;;  %v1250_v26 = vadd.f32 %v1249_v45, %v1246_v51  ;;  %s3042_s11 = sld [smem:[#allocation17 + $0x1]] }
 0x12b   :  { %v1285_v17 = vstv %s2927_s14  ;;  %v1288_v49 = vstv %s2929_s17  ;;  %v1283_v28 = vmul.f32 %v1282_v27, %v2873_v52  ;;  %v1292_v63 = vstv %s2934_s0  ;;  %s3044_s14 = sld [smem:[#allocation16 + $0x81]]  ;;  %s3047_s17 = sld [smem:[#allocation16 + $0x82]] }
 0x12c   :  { %v1268_v62 = vadd.f32 %v1267_v29, %v1264_v37  ;;  %v1289_v46 = vmul.f32 %v1288_v49, %v2876_v8  ;;  %v2987_v53 = vadd.f32 %v1253_v55, %v1250_v26  ;;  %v1293_v30 = vmul.f32 %v1292_v63, %v2884_v9  ;;  %s3049_s0 = sld [smem:[#allocation16 + $0x83]] }
 0x12d   :  { %v1296_v61 = vstv %s2938_s18  ;;  %v1300_v36 = vstv %s2940_s19  ;;  %v1286_v31 = vadd.f32 %v1285_v17, %v1283_v28  ;;  %v1304_v43 = vstv %s2947_s6  ;;  %s3055_s18 = sld [smem:[#allocation16 + $0x5]]  ;;  %s3066_s19 = sld [smem:[#allocation16 + $0x84]] }
 0x12e   :  { %v1272_v5 = vadd.f32 %v1271_v3, %v1268_v62  ;;  %v1297_v47 = vmul.f32 %v1296_v61, %v2886_v21  ;;  %v1301_v41 = vmul.f32 %v1300_v36, %v2907_v54  ;;  %v1308_v7 = vstv %s2949_s8  ;;  %s3071_s6 = sld [smem:[#allocation16 + $0x85]]  ;;  %s3073_s8 = sld [smem:[#allocation16 + $0x100]] }
 0x12f   :  { %v1311_v6 = vstv %s2953_s21  ;;  %v1314_v19 = vstv %s2955_s22  ;;  %v1290_v56 = vadd.f32 %v1289_v46, %v1286_v31  ;;  %v1305_v32 = vmul.f32 %v1304_v43, %v2942_v4  ;;  %s3079_s21 = sld [smem:[#allocation17 + $0x2]]  ;;  %s3081_s22 = sld [smem:[#allocation16 + $0x101]] }
 0x130   :  { %v1276_v12 = vadd.f32 %v1275_v38, %v1272_v5  ;;  %v1309_v60 = vmul.f32 %v1308_v7, %v2873_v52  ;;  %v1315_v16 = vmul.f32 %v1314_v19, %v2876_v8  ;;  %v1318_v50 = vstv %s2960_s24  ;;  %s3087_s24 = sld [smem:[#allocation16 + $0x102]] }
 0x131   :  { %v1322_v34 = vstv %s2965_s1  ;;  %v1326_v42 = vstv %s2967_s2  ;;  %v1294_v35 = vadd.f32 %v1293_v30, %v1290_v56  ;;  %v1319_v1 = vmul.f32 %v1318_v50, %v2884_v9  ;;  %s3089_s1 = sld [smem:[#allocation16 + $0x103]]  ;;  %s3098_s2 = sld [smem:[#allocation16 + $0x104]] }
 0x132   :  { %v1280_v39 = vadd.f32 %v1279_v24, %v1276_v12  ;;  %v1312_v22 = vadd.f32 %v1311_v6, %v1309_v60  ;;  %v1323_v2 = vmul.f32 %v1322_v34, %v2886_v21  ;;  %v1327_v45 = vmul.f32 %v1326_v42, %v2907_v54 }
 0x133   :  { %v1330_v23 = vstv %s2976_s4  ;;  %v1334_v44 = vstv %s2978_s25  ;;  %v1298_v0 = vadd.f32 %v1297_v47, %v1294_v35  ;;  %v1337_v40 = vstv %s2983_s29  ;;  %s3100_s4 = sld [smem:[#allocation16 + $0x180]]  ;;  %s3104_s25 = sld [smem:[#allocation16 + $0x105]] }
 0x134   :  { %v1316_v10 = vadd.f32 %v1315_v16, %v1312_v22  ;;  %v1331_v20 = vmul.f32 %v1330_v23, %v2942_v4  ;;  %v1335_v15 = vmul.f32 %v1334_v44, %v2873_v52  ;;  %v1340_v11 = vstv %s2985_s10  ;;  %s3106_s29 = sld [smem:[#allocation17 + $0x3]]  ;;  %s3111_s10 = sld [smem:[#allocation16 + $0x181]] }
 0x135   :  { %v1344_v18 = vstv %s2992_s16  ;;  %v1348_v25 = vstv %s2994_s30  ;;  %v1302_v14 = vadd.f32 %v1301_v41, %v1298_v0  ;;  %v1341_v55 = vmul.f32 %v1340_v11, %v2876_v8  ;;  %s3113_s16 = sld [smem:[#allocation16 + $0x182]]  ;;  %s3120_s30 = sld [smem:[#allocation16 + $0x183]] }
 0x136   :  { %v1320_v29 = vadd.f32 %v1319_v1, %v1316_v10  ;;  %v1338_v48 = vadd.f32 %v1337_v40, %v1335_v15  ;;  %v1345_v52 = vmul.f32 %v1344_v18, %v2884_v9  ;;  %v1349_v13 = vmul.f32 %v1348_v25, %v2886_v21 }
 0x137   :  { %v1352_v33 = vstv %s3002_s12  ;;  %v1356_v51 = vstv %s3004_s15  ;;  %v1306_v3 = vadd.f32 %v1305_v32, %v1302_v14  ;;  %v1359_v21 = vmul.f32 0.01, %v2969_v59  ;;  %s3124_s12 = sld [smem:[#allocation16 + $0x184]]  ;;  %s3130_s15 = sld [smem:[#allocation16 + $0x185]] }
 0x138   :  { %v1324_v57 = vadd.f32 %v1323_v2, %v1320_v29  ;;  %v1342_v58 = vadd.f32 %v1341_v55, %v1338_v48  ;;  %v1353_v8 = vmul.f32 %v1352_v33, %v2907_v54  ;;  %v1357_v9 = vmul.f32 %v1356_v51, %v2942_v4 }
 0x139   :  { %v1361_v37 = vmul.f32 0.01, %v2987_v53  ;;  %v1363_v38 = vmul.f32 0.01, %v1280_v39  ;;  %v1365_v27 = vmul.f32 0.01, %v1306_v3  ;;  %v1372_v17 = vstv %s3013_s7 }
 0x13a   :  { %v1328_v24 = vadd.f32 %v1327_v45, %v1324_v57  ;;  %v1346_v26 = vadd.f32 %v1345_v52, %v1342_v58  ;;  %v3058_v54 = vmax.f32 %v2969_v59, %v1359_v21  ;;  %v1375_v62 = vstv %s3019_s20  ;;  %s1912_s7 = smov [#allocation19]  }
 0x13b   :  { %v3061_v49 = vmax.f32 %v2987_v53, %v1361_v37  ;;  %v3063_v4 = vmax.f32 %v1280_v39, %v1363_v38  ;;  %v3068_v63 = vmax.f32 %v1306_v3, %v1365_v27  ;;  %v1378_v30 = vstv %s3023_s23  ;;  %s1487_s20 = sshll.u32 %s1912_s7, 4  ;;  %s1488_s20 = int_to_ptr.vmem [resolvable:$true] %s1487_s20 }
 0x13c   :  { %v1332_v28 = vadd.f32 %v1331_v20, %v1328_v24  ;;  %v1350_v46 = vadd.f32 %v1349_v13, %v1346_v26  ;;  %v1373_v59 = vmul.f32 %v1372_v17, %v3058_v54  ;;  %v1382_v61 = vstv %s3029_s13  ;;  %s1855_s23 = scalar_lea.vmem %s1488_s20, 512  ;;  %p1860_p3 = scmp.lt.s32.totalorder %s1488_s20, %s1488_s20 }
 0x13d   :  { %v1379_v53 = vmul.f32 %v1378_v30, %v3061_v49  ;;  %v1386_v36 = vstv %s3031_s3  ;;  %v1383_v47 = vmul.f32 %v1382_v61, %v3063_v4  ;;  %v1390_v7 = vstv %s3034_s5  ;;  %p1856_p2 = scmp.ne.s32.totalorder %s1488_s20, %s1855_s23  ;;  %p1861_p4 = scmp.lt.s32.totalorder %s1855_s23, %s1855_s23 }
 0x13e   :  { %v1354_v5 = vadd.f32 %v1353_v8, %v1350_v46  ;;  %v1367_v31 = vmul.f32 0.01, %v1332_v28  ;;  %v1376_v41 = vadd.f32 %v1375_v62, %v1373_v59  ;;  %v1387_v43 = vmul.f32 %v1386_v36, %v3068_v63 }
 0x13f   :  { %v1398_v6 = vstv %s3036_s26  ;;  %v1401_v32 = vstv %s3042_s11  ;;  %v1404_v16 = vstv %s3044_s14  ;;  %v1408_v50 = vstv %s3047_s17  ;;  %p1862_p5 = por %p1861_p4, %p1860_p3 }
 0x140   :  { %v1358_v19 = vadd.f32 %v1357_v9, %v1354_v5  ;;  %v3091_v12 = vmax.f32 %v1332_v28, %v1367_v31  ;;  %v1399_v56 = vmul.f32 %v1398_v6, %v3058_v54  ;;  %v1380_v60 = vadd.f32 %v1379_v53, %v1376_v41 }
 0x141   :  { %v1412_v34 = vstv %s3049_s0  ;;  %v1394_v39 = vstv %s3055_s18  ;;  %v1405_v22 = vmul.f32 %v1404_v16, %v3061_v49  ;;  %v1409_v45 = vmul.f32 %v1408_v50, %v3063_v4  ;;  %p1863_p6 = pnand %p1862_p5, %p1856_p2 }
 0x142   :  { %v1369_v42 = vmul.f32 0.01, %v1358_v19  ;;  %v1402_v35 = vadd.f32 %v1401_v32, %v1399_v56  ;;  %v1384_v1 = vadd.f32 %v1383_v47, %v1380_v60  ;;  %v1391_v2 = vmul.f32 %v1390_v7, %v3091_v12 }
 0x143   :  { %v1416_v23 = vstv %s3066_s19  ;;  %v1413_v10 = vmul.f32 %v1412_v34, %v3068_v63  ;;  %v1420_v20 = vstv %s3071_s6  ;;  %v1424_v40 = vstv %s3073_s8 }
 0x144   :  { %v1370_v44 = vmax.f32 %v1358_v19, %v1369_v42  ;;  %v1406_v0 = vadd.f32 %v1405_v22, %v1402_v35  ;;  %v1388_v15 = vadd.f32 %v1387_v43, %v1384_v1  ;;  %v1427_v11 = vstv %s3079_s21 }
 0x145   :  { %v1430_v18 = vstv %s3081_s22  ;;  %v1417_v29 = vmul.f32 %v1416_v23, %v3091_v12  ;;  %v1425_v48 = vmul.f32 %v1424_v40, %v3058_v54  ;;  %v1434_v13 = vstv %s3087_s24 }
 0x146   :  { %v1395_v25 = vmul.f32 %v1394_v39, %v1370_v44  ;;  %v1410_v14 = vadd.f32 %v1409_v45, %v1406_v0  ;;  %v1392_v55 = vadd.f32 %v1391_v2, %v1388_v15  ;;  %v1431_v52 = vmul.f32 %v1430_v18, %v3061_v49 }
 0x147   :  { %v1438_v33 = vstv %s3089_s1  ;;  %v1421_v3 = vmul.f32 %v1420_v20, %v1370_v44  ;;  %v1428_v57 = vadd.f32 %v1427_v11, %v1425_v48  ;;  %v1435_v58 = vmul.f32 %v1434_v13, %v3063_v4 }
 0x148   :  { %v1414_v51 = vadd.f32 %v1413_v10, %v1410_v14  ;;  %v1396_v8 = vadd.f32 %v1395_v25, %v1392_v55  ;;  %v1442_v9 = vstv %s3098_s2  ;;  %v1450_v21 = vstv %s3100_s4 }
 0x149   :  { %v1432_v38 = vadd.f32 %v1431_v52, %v1428_v57  ;;  %v1439_v24 = vmul.f32 %v1438_v33, %v3068_v63  ;;  %v1446_v26 = vstv %s3104_s25  ;;  %v1451_v27 = vmul.f32 %v1450_v21, %v3058_v54 }
 0x14a   :  { %v1418_v37 = vadd.f32 %v1417_v29, %v1414_v51  ;;  %v1453_v17 = vstv %s3106_s29  ;;  %v1456_v62 = vstv %s3111_s10  ;;  %v1460_v28 = vstv %s3113_s16  ;;  %1475 = vst [vmem:[#allocation19] sm:$0xff] %v1396_v8 }
 0x14b   :  { %v1436_v30 = vadd.f32 %v1435_v58, %v1432_v38  ;;  %v1443_v59 = vmul.f32 %v1442_v9, %v3091_v12  ;;  %v1457_v53 = vmul.f32 %v1456_v62, %v3061_v49  ;;  %v1454_v61 = vadd.f32 %v1453_v17, %v1451_v27 }
 0x14c   :  { %v1422_v46 = vadd.f32 %v1421_v3, %v1418_v37  ;;  %v1461_v36 = vmul.f32 %v1460_v28, %v3063_v4  ;;  %v1464_v5 = vstv %s3120_s30  ;;  %v1447_v47 = vmul.f32 %v1446_v26, %v1370_v44 }
 0x14d   :  { %v1440_v31 = vadd.f32 %v1439_v24, %v1436_v30  ;;  %v1468_v41 = vstv %s3124_s12  ;;  %v1458_v54 = vadd.f32 %v1457_v53, %v1454_v61  ;;  %v1465_v43 = vmul.f32 %v1464_v5, %v3068_v63 }
 0x14e   :  { %1477 = vst [vmem:[#allocation19 + $0x8] sm:$0xff] %v1422_v46  ;;  %v1472_v6 = vstv %s3130_s15  ;;  %v1469_v56 = vmul.f32 %v1468_v41, %v3091_v12 }
 0x14f   :  { %v1444_v7 = vadd.f32 %v1443_v59, %v1440_v31  ;;  %v1462_v19 = vadd.f32 %v1461_v36, %v1458_v54  ;;  %v1473_v16 = vmul.f32 %v1472_v6, %v1370_v44 }
 0x151   :  { %v1448_v32 = vadd.f32 %v1447_v47, %v1444_v7  ;;  %v1466_v60 = vadd.f32 %v1465_v43, %v1462_v19 }
 0x153   :  { %1479 = vst [vmem:[#allocation19 + $0x10] sm:$0xff] %v1448_v32  ;;  %v1470_v49 = vadd.f32 %v1469_v56, %v1466_v60 }
 0x155   :  { %v1474_v4 = vadd.f32 %v1473_v16, %v1470_v49 }
 0x157   :  { %1481 = vst [vmem:[#allocation19 + $0x18] sm:$0xff] %v1474_v4 }
 0x158   :  { %1866 = shalt.err (!%p1863_p6)
}
 0x159   :  { %s1867_s5 = scalar_lea.hbm %s3172_s9, 512 }
 0x15a   :  { %p1868_p7 = scmp.ne.s32.totalorder %s3172_s9, %s1867_s5  ;;  %p1871_p8 = scmp.lt.u32.totalorder %s1867_s5, %s3172_s9 }
 0x15c   :  { %p1873_p9 = pnand %p1871_p8, %p1868_p7 }
 0x15e   :  { %1876 = shalt.err (!%p1873_p9)
}
 0x15f   :  { %1493 = dma.vmem_to_hbm [thread:$0]  %s1488_s20, 512, %s3172_s9, [#allocation4], %s1898_s27, %s1898_s27, %s1899_s28  }
 0x160   :  { %1893 = dma.done.wait [#allocation4], 512  }
 0x161   :  { %1894 = vsyncadd [#allocation4], 4294966784 }
 0x162   :  { %1497 = vsyncpa [#allocation3], 1 }
 0x163   :  { %1498 = vsyncpa [#allocation4], 1 }
 0x164   :  { %1499 = vsyncpa [#allocation5], 1 }
 0x165   :  { %1500 = vsyncpa [#allocation15], 1 }
 0x166   :  { %1501 = vsyncpa [#allocation6], 1 }
 0x167   :  { %1502 = vsyncpa [#allocation10], 1 }
 0x168   :  { %1503 = vsyncpa [#allocation13], 1 }
 0x169   :  { %1504 = vsyncpa [#allocation18], 1 }

</bundles_post_ra>
